<compile_context>
chip_gen: v7x
topology: tpu7x:2x2x1
jax: 0.10.0
libtpu: 0.0.40
codegen_flags: <defaults>
</compile_context>

<pallas_src>
import functools

import jax
import jax.numpy as jnp
from jax import lax
from jax.experimental import pallas as pl
from jax.experimental.pallas import tpu as pltpu


def _attention_kernel(x_ref, w_ref, b_ref, out_ref, masks_ref,
                      q_all, k_all, v_all, o_all,
                      *, num_heads, head_dim, scale, apply_mask, q_tile):
    x = x_ref[0]                                        # (N, C) f32
    N, C = x.shape
    d = head_dim

    # ---- Dense, lane-wide QKV projections: three (N,C)@(C,C) MXU matmuls. ---
    # Q is pre-scaled once so neither the mask logits nor the per-head scores
    # need a further multiply (the mask logits only need the 1/H head-mean).
    q_all[...] = jnp.dot(x, w_ref[0], preferred_element_type=jnp.float32) * scale
    k_all[...] = jnp.dot(x, w_ref[1], preferred_element_type=jnp.float32)
    v_all[...] = jnp.dot(x, w_ref[2], preferred_element_type=jnp.float32)

    # ---- Mask logits from the last two query rows. --------------------------
    # mean over heads of per-head (q_h . k_h) == full-C contraction / H because
    # head slices are contiguous along C -> one (2,C)@(C,N) matmul replaces the
    # previous 3H thin per-head matmuls.
    inv_h = 1.0 / num_heads
    q_tail = q_all[N - 2:N, :]                                        # (2, C)
    s_tail = lax.dot_general(q_tail, k_all[...], (((1,), (1,)), ((), ())),
                             preferred_element_type=jnp.float32)       # (2, N)
    m_rows = jax.nn.sigmoid(s_tail * inv_h)                            # [mask; mask_aug]
    mask_fuse_row = jnp.maximum(m_rows[0:1, :], m_rows[1:2, :])        # (1, N)
    # Packed lane-dense output rows: [mask, mask_aug, mask_fuse] (two stores).
    masks_ref[0, 0:2, :] = m_rows
    masks_ref[0, 2:3, :] = mask_fuse_row

    if apply_mask:
        # softmax(s)[i,j] * mask_fuse[j] applied to v == scaling v's rows, so
        # fold the mask into V once for all heads.  The column orientation is
        # produced by one thin (N,C)@(C,2) matmul (cheaper/safer than an
        # in-kernel (1,N)->(N,1) transpose).
        s_tail_nt = lax.dot_general(k_all[...], q_tail, (((1,), (1,)), ((), ())),
                                    preferred_element_type=jnp.float32)  # (N, 2)
        m_cols = jax.nn.sigmoid(s_tail_nt * inv_h)
        mask_fuse_col = jnp.max(m_cols, axis=-1, keepdims=True)          # (N, 1)
        v_all[...] = v_all[...] * mask_fuse_col

    # ---- Per-head attention, query-tiled flash style. -----------------------
    # Static unroll: every iteration's result is flushed into the o_all VMEM
    # slab, so no SSA value (in particular no (N,C) accumulator) stays live
    # across head iterations.  fori_loop would need lane-dim dynamic slices at
    # d granularity, which Mosaic does not handle well for small d.
    for h in range(num_heads):
        lo, hi = h * d, (h + 1) * d
        k_h = k_all[:, lo:hi]                                          # (N, d)
        v_h = v_all[:, lo:hi]                                          # (N, d)
        for q0 in range(0, N, q_tile):
            tq = min(q_tile, N - q0)
            q_t = q_all[q0:q0 + tq, lo:hi]                             # (tq, d)
            s = lax.dot_general(q_t, k_h, (((1,), (1,)), ((), ())),
                                preferred_element_type=jnp.float32)    # (tq, N)
            m = jnp.max(s, axis=-1, keepdims=True)
            e = jnp.exp(s - m)                       # unnormalized softmax numerator
            r = jnp.sum(e, axis=-1, keepdims=True)   # row sums (pre-mask, as in torch)
            o = jnp.dot(e, v_h, preferred_element_type=jnp.float32)    # (tq, d)
            o_all[q0:q0 + tq, lo:hi] = o * pl.reciprocal(r, approx=True)

    # ---- Single full-width output projection + bias. ------------------------
    out = jnp.dot(o_all[...], w_ref[3], preferred_element_type=jnp.float32)
    out_ref[0] = (out + b_ref[...]).astype(out_ref.dtype)


def _vmem_limit_bytes(N, C, q_tile):
    f32 = 4
    weights = (4 * C * C + C) * f32 * 2                 # packed weights (x2 buffering)
    io = (2 * N * C + 2 * N * C + 2 * 3 * N) * f32      # double-buffered x / out / masks
    scratch = 4 * N * C * f32                           # q/k/v/o VMEM slabs
    working = (3 * q_tile * N + 16 * N) * f32           # score/exp tile + misc vectors
    need = weights + io + scratch + working
    try:
        cap_phys = int(pltpu.get_tpu_info().vmem_capacity_bytes)
    except Exception:
        cap_phys = 64 * 1024 * 1024                     # conservative (v7x-sized) fallback
    cap = int(0.85 * cap_phys)                          # leave headroom for compiler scratch
    return int(min(max(int(need * 1.25), 32 * 1024 * 1024), cap))


def attention_forward(x, w_qkv, w_proj, b_proj, *, num_heads, cur_depth, q_tile=256):
    B, N, C = x.shape
    assert C % num_heads == 0
    d = C // num_heads
    scale = d ** (-0.5)
    q_tile = min(q_tile, N)

    # One packed, lane-dense weight slab: [Wq, Wk, Wv, Wproj] -> (4, C, C).
    w_all = jnp.stack(
        [w_qkv[:, 0:C], w_qkv[:, C:2 * C], w_qkv[:, 2 * C:3 * C], w_proj], axis=0)
    bp = b_proj.reshape(1, C)

    kernel = functools.partial(
        _attention_kernel,
        num_heads=num_heads, head_dim=d, scale=scale,
        apply_mask=bool(cur_depth >= 9), q_tile=q_tile)

    out_shapes = (
        jax.ShapeDtypeStruct((B, N, C), x.dtype),        # projected output
        jax.ShapeDtypeStruct((B, 3, N), jnp.float32),    # packed [mask, mask_aug, mask_fuse]
    )

    # grid=(B,) keeps one batch element per grid step; with B >= 2 this also
    # load-balances v7x's two TensorCores.  (For B == 1 a second parallel axis
    # over query tiles would be needed -- not required for this module's use.)
    grid_spec = pltpu.PrefetchScalarGridSpec(
        num_scalar_prefetch=0,
        grid=(B,),
        in_specs=[
            pl.BlockSpec((1, N, C), lambda b: (b, 0, 0)),      # x
            pl.BlockSpec((4, C, C), lambda b: (0, 0, 0)),      # packed weights (resident)
            pl.BlockSpec((1, C), lambda b: (0, 0)),            # proj bias
        ],
        out_specs=[
            pl.BlockSpec((1, N, C), lambda b: (b, 0, 0)),
            pl.BlockSpec((1, 3, N), lambda b: (b, 0, 0)),
        ],
        scratch_shapes=[pltpu.VMEM((N, C), jnp.float32)] * 4,  # Q, K, V, O slabs
    )

    out, masks = pl.pallas_call(
        kernel,
        out_shape=out_shapes,
        grid_spec=grid_spec,
        compiler_params=pltpu.CompilerParams(
            dimension_semantics=("parallel",),
            vmem_limit_bytes=_vmem_limit_bytes(N, C, q_tile)),
    )(x, w_all, bp)

    # TODO(synk): a bf16 MXU feed (cast x / weights, keep f32 accumulation and
    #             elementwise math) would further speed up v6e/v7x; kept f32
    #             here for bit-closer agreement with the PyTorch reference.
    mask = masks[:, 0:1, :].reshape(B, 1, 1, N)
    mask_aug = masks[:, 1:2, :].reshape(B, 1, 1, N)
    mask_fuse = masks[:, 2:3, :].reshape(B, 1, 1, N)
    return out, mask, mask_fuse, mask_aug


def reference_forward(x, w_qkv, w_proj, b_proj, num_heads, cur_depth):
    """Pure-JAX transcription of the PyTorch forward (for verification)."""
    with jax.default_matmul_precision("highest"):
        B, N, C = x.shape
        d = C // num_heads
        scale = d ** (-0.5)
        qkv = (x @ w_qkv).reshape(B, N, 3, num_heads, d).transpose(2, 0, 3, 1, 4)
        q, k, v = qkv[0], qkv[1], qkv[2]                          # (B, H, N, d)
        attn = jnp.einsum('bhnd,bhmd->bhnm', q, k) * scale        # (B, H, N, N)
        mask = jax.nn.sigmoid(attn[:, :, -2, :][:, :, None, :].mean(1)[:, None])
        mask_aug = jax.nn.sigmoid(attn[:, :, -1, :][:, :, None, :].mean(1)[:, None])
        mask_fuse = jnp.maximum(mask, mask_aug)                   # (B, 1, 1, N)
        attn = jax.nn.softmax(attn, axis=-1)
        if cur_depth >= 9:
            attn = attn * mask_fuse
        out = jnp.einsum('bhnm,bhmd->bhnd', attn, v).transpose(0, 2, 1, 3).reshape(B, N, C)
        out = out @ w_proj + b_proj
        return out, mask, mask_fuse, mask_aug


if __name__ == "__main__":
    B, N, C, H = 2, 8, 32, 8
    cur_depth = 9

    key = jax.random.PRNGKey(0)
    kx, k1, k2, k3 = jax.random.split(key, 4)
    x = jax.random.normal(kx, (B, N, C), jnp.float32)
    w_qkv = jax.random.normal(k1, (C, 3 * C), jnp.float32) * 0.1   # qkv_bias=False
    w_proj = jax.random.normal(k2, (C, C), jnp.float32) * 0.1
    b_proj = jax.random.normal(k3, (C,), jnp.float32) * 0.1

    result = attention_forward(x, w_qkv, w_proj, b_proj,
                               num_heads=H, cur_depth=cur_depth)
    result = jax.block_until_ready(result)

    expected = reference_forward(x, w_qkv, w_proj, b_proj, H, cur_depth)
    for got, ref in zip(result, expected):
        assert got.shape == ref.shape, (got.shape, ref.shape)
        assert jnp.allclose(got, ref, atol=2e-2, rtol=2e-2), \
            float(jnp.max(jnp.abs(got - ref)))

    print("KERNEL_OK")
</pallas_src>

<mosaic_0001>
module attributes {stable_mosaic.version = 11 : i64} {
  func.func @_attention_kernel(%arg0: i32, %arg1: memref<1x8x32xf32, #tpu.memory_space<vmem>>, %arg2: memref<4x32x32xf32, #tpu.memory_space<vmem>>, %arg3: memref<1x32xf32, #tpu.memory_space<vmem>>, %arg4: memref<1x8x32xf32, #tpu.memory_space<vmem>>, %arg5: memref<1x3x8xf32, #tpu.memory_space<vmem>>, %arg6: memref<8x32xf32, #tpu.memory_space<vmem>>, %arg7: memref<8x32xf32, #tpu.memory_space<vmem>>, %arg8: memref<8x32xf32, #tpu.memory_space<vmem>>, %arg9: memref<8x32xf32, #tpu.memory_space<vmem>>) attributes {dimension_semantics = [#tpu.dimension_semantics<parallel>], iteration_bounds = array<i64: 2>, scalar_prefetch = 0 : i64, scratch_operands = 4 : i64, tpu.core_type = #tpu.core_type<tc>, window_params = [{transform_indices = @transform_0, window_bounds = array<i64: 1, 8, 32>}, {pipeline_mode = #tpu.pipeline_mode<synchronous>, transform_indices = @transform_1, window_bounds = array<i64: 4, 32, 32>}, {pipeline_mode = #tpu.pipeline_mode<synchronous>, transform_indices = @transform_2, window_bounds = array<i64: 1, 32>}, {transform_indices = @transform_3, window_bounds = array<i64: 1, 8, 32>}, {transform_indices = @transform_4, window_bounds = array<i64: 1, 3, 8>}]} {
    %c0 = arith.constant 0 : index
    %c0_0 = arith.constant 0 : index
    %c0_1 = arith.constant 0 : index
    %0 = vector.load %arg1[%c0, %c0_0, %c0_1] : memref<1x8x32xf32, #tpu.memory_space<vmem>>, vector<1x8x32xf32>
    %1 = vector.shape_cast %0 : vector<1x8x32xf32> to vector<8x32xf32>
    %c0_2 = arith.constant 0 : index
    %c0_3 = arith.constant 0 : index
    %c0_4 = arith.constant 0 : index
    %2 = vector.load %arg2[%c0_2, %c0_3, %c0_4] : memref<4x32x32xf32, #tpu.memory_space<vmem>>, vector<1x32x32xf32>
    %3 = vector.shape_cast %2 : vector<1x32x32xf32> to vector<32x32xf32>
    %cst = arith.constant dense<0.000000e+00> : vector<8x32xf32>
    %4 = tpu.matmul %1, %3, %cst {dimension_numbers = #tpu.dot_dimension_numbers<[1], [0], [0], [1], [0, 0, 1, 1], [], []>} : vector<8x32xf32>, vector<32x32xf32>, vector<8x32xf32> -> vector<8x32xf32>
    %cst_5 = arith.constant 5.000000e-01 : f32
    %5 = vector.broadcast %cst_5 : f32 to vector<8x32xf32>
    %6 = arith.mulf %4, %5 : vector<8x32xf32>
    %c0_6 = arith.constant 0 : index
    %c0_7 = arith.constant 0 : index
    %7 = vector.load %arg6[%c0_6, %c0_7] : memref<8x32xf32, #tpu.memory_space<vmem>>, vector<8x32xf32>
    tpu.vector_store %arg6[%c0_6, %c0_7], %6 {strides = array<i32>} : memref<8x32xf32, #tpu.memory_space<vmem>>, vector<8x32xf32>,
    %c1 = arith.constant 1 : index
    %c0_8 = arith.constant 0 : index
    %c0_9 = arith.constant 0 : index
    %8 = vector.load %arg2[%c1, %c0_8, %c0_9] : memref<4x32x32xf32, #tpu.memory_space<vmem>>, vector<1x32x32xf32>
    %9 = vector.shape_cast %8 : vector<1x32x32xf32> to vector<32x32xf32>
    %cst_10 = arith.constant dense<0.000000e+00> : vector<8x32xf32>
    %10 = tpu.matmul %1, %9, %cst_10 {dimension_numbers = #tpu.dot_dimension_numbers<[1], [0], [0], [1], [0, 0, 1, 1], [], []>} : vector<8x32xf32>, vector<32x32xf32>, vector<8x32xf32> -> vector<8x32xf32>
    %c0_11 = arith.constant 0 : index
    %c0_12 = arith.constant 0 : index
    %11 = vector.load %arg7[%c0_11, %c0_12] : memref<8x32xf32, #tpu.memory_space<vmem>>, vector<8x32xf32>
    tpu.vector_store %arg7[%c0_11, %c0_12], %10 {strides = array<i32>} : memref<8x32xf32, #tpu.memory_space<vmem>>, vector<8x32xf32>,
    %c2 = arith.constant 2 : index
    %c0_13 = arith.constant 0 : index
    %c0_14 = arith.constant 0 : index
    %12 = vector.load %arg2[%c2, %c0_13, %c0_14] : memref<4x32x32xf32, #tpu.memory_space<vmem>>, vector<1x32x32xf32>
    %13 = vector.shape_cast %12 : vector<1x32x32xf32> to vector<32x32xf32>
    %cst_15 = arith.constant dense<0.000000e+00> : vector<8x32xf32>
    %14 = tpu.matmul %1, %13, %cst_15 {dimension_numbers = #tpu.dot_dimension_numbers<[1], [0], [0], [1], [0, 0, 1, 1], [], []>} : vector<8x32xf32>, vector<32x32xf32>, vector<8x32xf32> -> vector<8x32xf32>
    %c0_16 = arith.constant 0 : index
    %c0_17 = arith.constant 0 : index
    %15 = vector.load %arg8[%c0_16, %c0_17] : memref<8x32xf32, #tpu.memory_space<vmem>>, vector<8x32xf32>
    tpu.vector_store %arg8[%c0_16, %c0_17], %14 {strides = array<i32>} : memref<8x32xf32, #tpu.memory_space<vmem>>, vector<8x32xf32>,
    %c6 = arith.constant 6 : index
    %c0_18 = arith.constant 0 : index
    %16 = vector.load %arg6[%c6, %c0_18] : memref<8x32xf32, #tpu.memory_space<vmem>>, vector<2x32xf32>
    %c0_19 = arith.constant 0 : index
    %c0_20 = arith.constant 0 : index
    %17 = vector.load %arg7[%c0_19, %c0_20] : memref<8x32xf32, #tpu.memory_space<vmem>>, vector<8x32xf32>
    %cst_21 = arith.constant dense<0.000000e+00> : vector<2x8xf32>
    %18 = tpu.matmul %16, %17, %cst_21 {dimension_numbers = #tpu.dot_dimension_numbers<[1], [1], [0], [0], [0, 0, 1, 0], [], []>} : vector<2x32xf32>, vector<8x32xf32>, vector<2x8xf32> -> vector<2x8xf32>
    %cst_22 = arith.constant 1.250000e-01 : f32
    %19 = vector.broadcast %cst_22 : f32 to vector<2x8xf32>
    %20 = arith.mulf %18, %19 : vector<2x8xf32>
    %21 = arith.negf %20 : vector<2x8xf32>
    %22 = math.exp %21 : vector<2x8xf32>
    %cst_23 = arith.constant 1.000000e+00 : f32
    %23 = vector.broadcast %cst_23 : f32 to vector<2x8xf32>
    %24 = arith.addf %23, %22 : vector<2x8xf32>
    %25 = arith.divf %23, %24 : vector<2x8xf32>
    %26 = vector.extract_strided_slice %25 {offsets = [0, 0], sizes = [1, 8], strides = [1, 1]} : vector<2x8xf32> to vector<1x8xf32>
    %27 = vector.extract_strided_slice %25 {offsets = [1, 0], sizes = [1, 8], strides = [1, 1]} : vector<2x8xf32> to vector<1x8xf32>
    %28 = arith.maximumf %26, %27 : vector<1x8xf32>
    %c0_24 = arith.constant 0 : index
    %c0_25 = arith.constant 0 : index
    %c0_26 = arith.constant 0 : index
    %29 = vector.load %arg5[%c0_24, %c0_25, %c0_26] : memref<1x3x8xf32, #tpu.memory_space<vmem>>, vector<1x2x8xf32>
    %30 = vector.shape_cast %29 : vector<1x2x8xf32> to vector<2x8xf32>
    %31 = vector.shape_cast %25 : vector<2x8xf32> to vector<1x2x8xf32>
    tpu.vector_store %arg5[%c0_24, %c0_25, %c0_26], %31 {strides = array<i32>} : memref<1x3x8xf32, #tpu.memory_space<vmem>>, vector<1x2x8xf32>,
    %c0_27 = arith.constant 0 : index
    %c2_28 = arith.constant 2 : index
    %c0_29 = arith.constant 0 : index
    %32 = vector.load %arg5[%c0_27, %c2_28, %c0_29] : memref<1x3x8xf32, #tpu.memory_space<vmem>>, vector<1x1x8xf32>
    %33 = vector.shape_cast %32 : vector<1x1x8xf32> to vector<1x8xf32>
    %34 = vector.shape_cast %28 : vector<1x8xf32> to vector<1x1x8xf32>
    tpu.vector_store %arg5[%c0_27, %c2_28, %c0_29], %34 {strides = array<i32>} : memref<1x3x8xf32, #tpu.memory_space<vmem>>, vector<1x1x8xf32>,
    %c0_30 = arith.constant 0 : index
    %c0_31 = arith.constant 0 : index
    %35 = vector.load %arg7[%c0_30, %c0_31] : memref<8x32xf32, #tpu.memory_space<vmem>>, vector<8x32xf32>
    %cst_32 = arith.constant dense<0.000000e+00> : vector<8x2xf32>
    %36 = tpu.matmul %35, %16, %cst_32 {dimension_numbers = #tpu.dot_dimension_numbers<[1], [1], [0], [0], [0, 0, 1, 0], [], []>} : vector<8x32xf32>, vector<2x32xf32>, vector<8x2xf32> -> vector<8x2xf32>
    %cst_33 = arith.constant 1.250000e-01 : f32
    %37 = vector.broadcast %cst_33 : f32 to vector<8x2xf32>
    %38 = arith.mulf %36, %37 : vector<8x2xf32>
    %39 = arith.negf %38 : vector<8x2xf32>
    %40 = math.exp %39 : vector<8x2xf32>
    %cst_34 = arith.constant 1.000000e+00 : f32
    %41 = vector.broadcast %cst_34 : f32 to vector<8x2xf32>
    %42 = arith.addf %41, %40 : vector<8x2xf32>
    %43 = arith.divf %41, %42 : vector<8x2xf32>
    %cst_35 = arith.constant dense<0xFF800000> : vector<8xf32>
    %44 = vector.multi_reduction <maximumf>, %43, %cst_35 [1] : vector<8x2xf32> to vector<8xf32>
    %45 = vector.shape_cast %44 : vector<8xf32> to vector<8x1xf32>
    %c0_36 = arith.constant 0 : index
    %c0_37 = arith.constant 0 : index
    %46 = vector.load %arg8[%c0_36, %c0_37] : memref<8x32xf32, #tpu.memory_space<vmem>>, vector<8x32xf32>
    %47 = vector.broadcast %45 : vector<8x1xf32> to vector<8x32xf32>
    %48 = arith.mulf %46, %47 : vector<8x32xf32>
    %c0_38 = arith.constant 0 : index
    %c0_39 = arith.constant 0 : index
    %49 = vector.load %arg8[%c0_38, %c0_39] : memref<8x32xf32, #tpu.memory_space<vmem>>, vector<8x32xf32>
    tpu.vector_store %arg8[%c0_38, %c0_39], %48 {strides = array<i32>} : memref<8x32xf32, #tpu.memory_space<vmem>>, vector<8x32xf32>,
    %c0_40 = arith.constant 0 : index
    %c0_41 = arith.constant 0 : index
    %50 = vector.load %arg7[%c0_40, %c0_41] : memref<8x32xf32, #tpu.memory_space<vmem>>, vector<8x4xf32>
    %c0_42 = arith.constant 0 : index
    %c0_43 = arith.constant 0 : index
    %51 = vector.load %arg8[%c0_42, %c0_43] : memref<8x32xf32, #tpu.memory_space<vmem>>, vector<8x4xf32>
    %c0_44 = arith.constant 0 : index
    %c0_45 = arith.constant 0 : index
    %52 = vector.load %arg6[%c0_44, %c0_45] : memref<8x32xf32, #tpu.memory_space<vmem>>, vector<8x4xf32>
    %cst_46 = arith.constant dense<0.000000e+00> : vector<8x8xf32>
    %53 = tpu.matmul %52, %50, %cst_46 {dimension_numbers = #tpu.dot_dimension_numbers<[1], [1], [0], [0], [0, 0, 1, 0], [], []>} : vector<8x4xf32>, vector<8x4xf32>, vector<8x8xf32> -> vector<8x8xf32>
    %cst_47 = arith.constant dense<0xFF800000> : vector<8xf32>
    %54 = vector.multi_reduction <maximumf>, %53, %cst_47 [1] : vector<8x8xf32> to vector<8xf32>
    %55 = vector.shape_cast %54 : vector<8xf32> to vector<8x1xf32>
    %56 = vector.broadcast %55 : vector<8x1xf32> to vector<8x8xf32>
    %57 = arith.subf %53, %56 : vector<8x8xf32>
    %58 = math.exp %57 : vector<8x8xf32>
    %cst_48 = arith.constant dense<0.000000e+00> : vector<8xf32>
    %59 = vector.multi_reduction <add>, %58, %cst_48 [1] : vector<8x8xf32> to vector<8xf32>
    %60 = vector.shape_cast %59 : vector<8xf32> to vector<8x1xf32>
    %cst_49 = arith.constant dense<0.000000e+00> : vector<8x4xf32>
    %61 = tpu.matmul %58, %51, %cst_49 {dimension_numbers = #tpu.dot_dimension_numbers<[1], [0], [0], [1], [0, 0, 1, 1], [], []>} : vector<8x8xf32>, vector<8x4xf32>, vector<8x4xf32> -> vector<8x4xf32>
    %62 = tpu.reciprocal %60 {approx = true} : vector<8x1xf32> -> vector<8x1xf32>
    %63 = vector.broadcast %62 : vector<8x1xf32> to vector<8x4xf32>
    %64 = arith.mulf %61, %63 : vector<8x4xf32>
    %c0_50 = arith.constant 0 : index
    %c0_51 = arith.constant 0 : index
    %65 = vector.load %arg9[%c0_50, %c0_51] : memref<8x32xf32, #tpu.memory_space<vmem>>, vector<8x4xf32>
    tpu.vector_store %arg9[%c0_50, %c0_51], %64 {strides = array<i32>} : memref<8x32xf32, #tpu.memory_space<vmem>>, vector<8x4xf32>,
    %c0_52 = arith.constant 0 : index
    %c4 = arith.constant 4 : index
    %66 = vector.load %arg7[%c0_52, %c4] : memref<8x32xf32, #tpu.memory_space<vmem>>, vector<8x4xf32>
    %c0_53 = arith.constant 0 : index
    %c4_54 = arith.constant 4 : index
    %67 = vector.load %arg8[%c0_53, %c4_54] : memref<8x32xf32, #tpu.memory_space<vmem>>, vector<8x4xf32>
    %c0_55 = arith.constant 0 : index
    %c4_56 = arith.constant 4 : index
    %68 = vector.load %arg6[%c0_55, %c4_56] : memref<8x32xf32, #tpu.memory_space<vmem>>, vector<8x4xf32>
    %cst_57 = arith.constant dense<0.000000e+00> : vector<8x8xf32>
    %69 = tpu.matmul %68, %66, %cst_57 {dimension_numbers = #tpu.dot_dimension_numbers<[1], [1], [0], [0], [0, 0, 1, 0], [], []>} : vector<8x4xf32>, vector<8x4xf32>, vector<8x8xf32> -> vector<8x8xf32>
    %cst_58 = arith.constant dense<0xFF800000> : vector<8xf32>
    %70 = vector.multi_reduction <maximumf>, %69, %cst_58 [1] : vector<8x8xf32> to vector<8xf32>
    %71 = vector.shape_cast %70 : vector<8xf32> to vector<8x1xf32>
    %72 = vector.broadcast %71 : vector<8x1xf32> to vector<8x8xf32>
    %73 = arith.subf %69, %72 : vector<8x8xf32>
    %74 = math.exp %73 : vector<8x8xf32>
    %cst_59 = arith.constant dense<0.000000e+00> : vector<8xf32>
    %75 = vector.multi_reduction <add>, %74, %cst_59 [1] : vector<8x8xf32> to vector<8xf32>
    %76 = vector.shape_cast %75 : vector<8xf32> to vector<8x1xf32>
    %cst_60 = arith.constant dense<0.000000e+00> : vector<8x4xf32>
    %77 = tpu.matmul %74, %67, %cst_60 {dimension_numbers = #tpu.dot_dimension_numbers<[1], [0], [0], [1], [0, 0, 1, 1], [], []>} : vector<8x8xf32>, vector<8x4xf32>, vector<8x4xf32> -> vector<8x4xf32>
    %78 = tpu.reciprocal %76 {approx = true} : vector<8x1xf32> -> vector<8x1xf32>
    %79 = vector.broadcast %78 : vector<8x1xf32> to vector<8x4xf32>
    %80 = arith.mulf %77, %79 : vector<8x4xf32>
    %c0_61 = arith.constant 0 : index
    %c4_62 = arith.constant 4 : index
    %81 = vector.load %arg9[%c0_61, %c4_62] : memref<8x32xf32, #tpu.memory_space<vmem>>, vector<8x4xf32>
    tpu.vector_store %arg9[%c0_61, %c4_62], %80 {strides = array<i32>} : memref<8x32xf32, #tpu.memory_space<vmem>>, vector<8x4xf32>,
    %c0_63 = arith.constant 0 : index
    %c8 = arith.constant 8 : index
    %82 = vector.load %arg7[%c0_63, %c8] : memref<8x32xf32, #tpu.memory_space<vmem>>, vector<8x4xf32>
    %c0_64 = arith.constant 0 : index
    %c8_65 = arith.constant 8 : index
    %83 = vector.load %arg8[%c0_64, %c8_65] : memref<8x32xf32, #tpu.memory_space<vmem>>, vector<8x4xf32>
    %c0_66 = arith.constant 0 : index
    %c8_67 = arith.constant 8 : index
    %84 = vector.load %arg6[%c0_66, %c8_67] : memref<8x32xf32, #tpu.memory_space<vmem>>, vector<8x4xf32>
    %cst_68 = arith.constant dense<0.000000e+00> : vector<8x8xf32>
    %85 = tpu.matmul %84, %82, %cst_68 {dimension_numbers = #tpu.dot_dimension_numbers<[1], [1], [0], [0], [0, 0, 1, 0], [], []>} : vector<8x4xf32>, vector<8x4xf32>, vector<8x8xf32> -> vector<8x8xf32>
    %cst_69 = arith.constant dense<0xFF800000> : vector<8xf32>
    %86 = vector.multi_reduction <maximumf>, %85, %cst_69 [1] : vector<8x8xf32> to vector<8xf32>
    %87 = vector.shape_cast %86 : vector<8xf32> to vector<8x1xf32>
    %88 = vector.broadcast %87 : vector<8x1xf32> to vector<8x8xf32>
    %89 = arith.subf %85, %88 : vector<8x8xf32>
    %90 = math.exp %89 : vector<8x8xf32>
    %cst_70 = arith.constant dense<0.000000e+00> : vector<8xf32>
    %91 = vector.multi_reduction <add>, %90, %cst_70 [1] : vector<8x8xf32> to vector<8xf32>
    %92 = vector.shape_cast %91 : vector<8xf32> to vector<8x1xf32>
    %cst_71 = arith.constant dense<0.000000e+00> : vector<8x4xf32>
    %93 = tpu.matmul %90, %83, %cst_71 {dimension_numbers = #tpu.dot_dimension_numbers<[1], [0], [0], [1], [0, 0, 1, 1], [], []>} : vector<8x8xf32>, vector<8x4xf32>, vector<8x4xf32> -> vector<8x4xf32>
    %94 = tpu.reciprocal %92 {approx = true} : vector<8x1xf32> -> vector<8x1xf32>
    %95 = vector.broadcast %94 : vector<8x1xf32> to vector<8x4xf32>
    %96 = arith.mulf %93, %95 : vector<8x4xf32>
    %c0_72 = arith.constant 0 : index
    %c8_73 = arith.constant 8 : index
    %97 = vector.load %arg9[%c0_72, %c8_73] : memref<8x32xf32, #tpu.memory_space<vmem>>, vector<8x4xf32>
    tpu.vector_store %arg9[%c0_72, %c8_73], %96 {strides = array<i32>} : memref<8x32xf32, #tpu.memory_space<vmem>>, vector<8x4xf32>,
    %c0_74 = arith.constant 0 : index
    %c12 = arith.constant 12 : index
    %98 = vector.load %arg7[%c0_74, %c12] : memref<8x32xf32, #tpu.memory_space<vmem>>, vector<8x4xf32>
    %c0_75 = arith.constant 0 : index
    %c12_76 = arith.constant 12 : index
    %99 = vector.load %arg8[%c0_75, %c12_76] : memref<8x32xf32, #tpu.memory_space<vmem>>, vector<8x4xf32>
    %c0_77 = arith.constant 0 : index
    %c12_78 = arith.constant 12 : index
    %100 = vector.load %arg6[%c0_77, %c12_78] : memref<8x32xf32, #tpu.memory_space<vmem>>, vector<8x4xf32>
    %cst_79 = arith.constant dense<0.000000e+00> : vector<8x8xf32>
    %101 = tpu.matmul %100, %98, %cst_79 {dimension_numbers = #tpu.dot_dimension_numbers<[1], [1], [0], [0], [0, 0, 1, 0], [], []>} : vector<8x4xf32>, vector<8x4xf32>, vector<8x8xf32> -> vector<8x8xf32>
    %cst_80 = arith.constant dense<0xFF800000> : vector<8xf32>
    %102 = vector.multi_reduction <maximumf>, %101, %cst_80 [1] : vector<8x8xf32> to vector<8xf32>
    %103 = vector.shape_cast %102 : vector<8xf32> to vector<8x1xf32>
    %104 = vector.broadcast %103 : vector<8x1xf32> to vector<8x8xf32>
    %105 = arith.subf %101, %104 : vector<8x8xf32>
    %106 = math.exp %105 : vector<8x8xf32>
    %cst_81 = arith.constant dense<0.000000e+00> : vector<8xf32>
    %107 = vector.multi_reduction <add>, %106, %cst_81 [1] : vector<8x8xf32> to vector<8xf32>
    %108 = vector.shape_cast %107 : vector<8xf32> to vector<8x1xf32>
    %cst_82 = arith.constant dense<0.000000e+00> : vector<8x4xf32>
    %109 = tpu.matmul %106, %99, %cst_82 {dimension_numbers = #tpu.dot_dimension_numbers<[1], [0], [0], [1], [0, 0, 1, 1], [], []>} : vector<8x8xf32>, vector<8x4xf32>, vector<8x4xf32> -> vector<8x4xf32>
    %110 = tpu.reciprocal %108 {approx = true} : vector<8x1xf32> -> vector<8x1xf32>
    %111 = vector.broadcast %110 : vector<8x1xf32> to vector<8x4xf32>
    %112 = arith.mulf %109, %111 : vector<8x4xf32>
    %c0_83 = arith.constant 0 : index
    %c12_84 = arith.constant 12 : index
    %113 = vector.load %arg9[%c0_83, %c12_84] : memref<8x32xf32, #tpu.memory_space<vmem>>, vector<8x4xf32>
    tpu.vector_store %arg9[%c0_83, %c12_84], %112 {strides = array<i32>} : memref<8x32xf32, #tpu.memory_space<vmem>>, vector<8x4xf32>,
    %c0_85 = arith.constant 0 : index
    %c16 = arith.constant 16 : index
    %114 = vector.load %arg7[%c0_85, %c16] : memref<8x32xf32, #tpu.memory_space<vmem>>, vector<8x4xf32>
    %c0_86 = arith.constant 0 : index
    %c16_87 = arith.constant 16 : index
    %115 = vector.load %arg8[%c0_86, %c16_87] : memref<8x32xf32, #tpu.memory_space<vmem>>, vector<8x4xf32>
    %c0_88 = arith.constant 0 : index
    %c16_89 = arith.constant 16 : index
    %116 = vector.load %arg6[%c0_88, %c16_89] : memref<8x32xf32, #tpu.memory_space<vmem>>, vector<8x4xf32>
    %cst_90 = arith.constant dense<0.000000e+00> : vector<8x8xf32>
    %117 = tpu.matmul %116, %114, %cst_90 {dimension_numbers = #tpu.dot_dimension_numbers<[1], [1], [0], [0], [0, 0, 1, 0], [], []>} : vector<8x4xf32>, vector<8x4xf32>, vector<8x8xf32> -> vector<8x8xf32>
    %cst_91 = arith.constant dense<0xFF800000> : vector<8xf32>
    %118 = vector.multi_reduction <maximumf>, %117, %cst_91 [1] : vector<8x8xf32> to vector<8xf32>
    %119 = vector.shape_cast %118 : vector<8xf32> to vector<8x1xf32>
    %120 = vector.broadcast %119 : vector<8x1xf32> to vector<8x8xf32>
    %121 = arith.subf %117, %120 : vector<8x8xf32>
    %122 = math.exp %121 : vector<8x8xf32>
    %cst_92 = arith.constant dense<0.000000e+00> : vector<8xf32>
    %123 = vector.multi_reduction <add>, %122, %cst_92 [1] : vector<8x8xf32> to vector<8xf32>
    %124 = vector.shape_cast %123 : vector<8xf32> to vector<8x1xf32>
    %cst_93 = arith.constant dense<0.000000e+00> : vector<8x4xf32>
    %125 = tpu.matmul %122, %115, %cst_93 {dimension_numbers = #tpu.dot_dimension_numbers<[1], [0], [0], [1], [0, 0, 1, 1], [], []>} : vector<8x8xf32>, vector<8x4xf32>, vector<8x4xf32> -> vector<8x4xf32>
    %126 = tpu.reciprocal %124 {approx = true} : vector<8x1xf32> -> vector<8x1xf32>
    %127 = vector.broadcast %126 : vector<8x1xf32> to vector<8x4xf32>
    %128 = arith.mulf %125, %127 : vector<8x4xf32>
    %c0_94 = arith.constant 0 : index
    %c16_95 = arith.constant 16 : index
    %129 = vector.load %arg9[%c0_94, %c16_95] : memref<8x32xf32, #tpu.memory_space<vmem>>, vector<8x4xf32>
    tpu.vector_store %arg9[%c0_94, %c16_95], %128 {strides = array<i32>} : memref<8x32xf32, #tpu.memory_space<vmem>>, vector<8x4xf32>,
    %c0_96 = arith.constant 0 : index
    %c20 = arith.constant 20 : index
    %130 = vector.load %arg7[%c0_96, %c20] : memref<8x32xf32, #tpu.memory_space<vmem>>, vector<8x4xf32>
    %c0_97 = arith.constant 0 : index
    %c20_98 = arith.constant 20 : index
    %131 = vector.load %arg8[%c0_97, %c20_98] : memref<8x32xf32, #tpu.memory_space<vmem>>, vector<8x4xf32>
    %c0_99 = arith.constant 0 : index
    %c20_100 = arith.constant 20 : index
    %132 = vector.load %arg6[%c0_99, %c20_100] : memref<8x32xf32, #tpu.memory_space<vmem>>, vector<8x4xf32>
    %cst_101 = arith.constant dense<0.000000e+00> : vector<8x8xf32>
    %133 = tpu.matmul %132, %130, %cst_101 {dimension_numbers = #tpu.dot_dimension_numbers<[1], [1], [0], [0], [0, 0, 1, 0], [], []>} : vector<8x4xf32>, vector<8x4xf32>, vector<8x8xf32> -> vector<8x8xf32>
    %cst_102 = arith.constant dense<0xFF800000> : vector<8xf32>
    %134 = vector.multi_reduction <maximumf>, %133, %cst_102 [1] : vector<8x8xf32> to vector<8xf32>
    %135 = vector.shape_cast %134 : vector<8xf32> to vector<8x1xf32>
    %136 = vector.broadcast %135 : vector<8x1xf32> to vector<8x8xf32>
    %137 = arith.subf %133, %136 : vector<8x8xf32>
    %138 = math.exp %137 : vector<8x8xf32>
    %cst_103 = arith.constant dense<0.000000e+00> : vector<8xf32>
    %139 = vector.multi_reduction <add>, %138, %cst_103 [1] : vector<8x8xf32> to vector<8xf32>
    %140 = vector.shape_cast %139 : vector<8xf32> to vector<8x1xf32>
    %cst_104 = arith.constant dense<0.000000e+00> : vector<8x4xf32>
    %141 = tpu.matmul %138, %131, %cst_104 {dimension_numbers = #tpu.dot_dimension_numbers<[1], [0], [0], [1], [0, 0, 1, 1], [], []>} : vector<8x8xf32>, vector<8x4xf32>, vector<8x4xf32> -> vector<8x4xf32>
    %142 = tpu.reciprocal %140 {approx = true} : vector<8x1xf32> -> vector<8x1xf32>
    %143 = vector.broadcast %142 : vector<8x1xf32> to vector<8x4xf32>
    %144 = arith.mulf %141, %143 : vector<8x4xf32>
    %c0_105 = arith.constant 0 : index
    %c20_106 = arith.constant 20 : index
    %145 = vector.load %arg9[%c0_105, %c20_106] : memref<8x32xf32, #tpu.memory_space<vmem>>, vector<8x4xf32>
    tpu.vector_store %arg9[%c0_105, %c20_106], %144 {strides = array<i32>} : memref<8x32xf32, #tpu.memory_space<vmem>>, vector<8x4xf32>,
    %c0_107 = arith.constant 0 : index
    %c24 = arith.constant 24 : index
    %146 = vector.load %arg7[%c0_107, %c24] : memref<8x32xf32, #tpu.memory_space<vmem>>, vector<8x4xf32>
    %c0_108 = arith.constant 0 : index
    %c24_109 = arith.constant 24 : index
    %147 = vector.load %arg8[%c0_108, %c24_109] : memref<8x32xf32, #tpu.memory_space<vmem>>, vector<8x4xf32>
    %c0_110 = arith.constant 0 : index
    %c24_111 = arith.constant 24 : index
    %148 = vector.load %arg6[%c0_110, %c24_111] : memref<8x32xf32, #tpu.memory_space<vmem>>, vector<8x4xf32>
    %cst_112 = arith.constant dense<0.000000e+00> : vector<8x8xf32>
    %149 = tpu.matmul %148, %146, %cst_112 {dimension_numbers = #tpu.dot_dimension_numbers<[1], [1], [0], [0], [0, 0, 1, 0], [], []>} : vector<8x4xf32>, vector<8x4xf32>, vector<8x8xf32> -> vector<8x8xf32>
    %cst_113 = arith.constant dense<0xFF800000> : vector<8xf32>
    %150 = vector.multi_reduction <maximumf>, %149, %cst_113 [1] : vector<8x8xf32> to vector<8xf32>
    %151 = vector.shape_cast %150 : vector<8xf32> to vector<8x1xf32>
    %152 = vector.broadcast %151 : vector<8x1xf32> to vector<8x8xf32>
    %153 = arith.subf %149, %152 : vector<8x8xf32>
    %154 = math.exp %153 : vector<8x8xf32>
    %cst_114 = arith.constant dense<0.000000e+00> : vector<8xf32>
    %155 = vector.multi_reduction <add>, %154, %cst_114 [1] : vector<8x8xf32> to vector<8xf32>
    %156 = vector.shape_cast %155 : vector<8xf32> to vector<8x1xf32>
    %cst_115 = arith.constant dense<0.000000e+00> : vector<8x4xf32>
    %157 = tpu.matmul %154, %147, %cst_115 {dimension_numbers = #tpu.dot_dimension_numbers<[1], [0], [0], [1], [0, 0, 1, 1], [], []>} : vector<8x8xf32>, vector<8x4xf32>, vector<8x4xf32> -> vector<8x4xf32>
    %158 = tpu.reciprocal %156 {approx = true} : vector<8x1xf32> -> vector<8x1xf32>
    %159 = vector.broadcast %158 : vector<8x1xf32> to vector<8x4xf32>
    %160 = arith.mulf %157, %159 : vector<8x4xf32>
    %c0_116 = arith.constant 0 : index
    %c24_117 = arith.constant 24 : index
    %161 = vector.load %arg9[%c0_116, %c24_117] : memref<8x32xf32, #tpu.memory_space<vmem>>, vector<8x4xf32>
    tpu.vector_store %arg9[%c0_116, %c24_117], %160 {strides = array<i32>} : memref<8x32xf32, #tpu.memory_space<vmem>>, vector<8x4xf32>,
    %c0_118 = arith.constant 0 : index
    %c28 = arith.constant 28 : index
    %162 = vector.load %arg7[%c0_118, %c28] : memref<8x32xf32, #tpu.memory_space<vmem>>, vector<8x4xf32>
    %c0_119 = arith.constant 0 : index
    %c28_120 = arith.constant 28 : index
    %163 = vector.load %arg8[%c0_119, %c28_120] : memref<8x32xf32, #tpu.memory_space<vmem>>, vector<8x4xf32>
    %c0_121 = arith.constant 0 : index
    %c28_122 = arith.constant 28 : index
    %164 = vector.load %arg6[%c0_121, %c28_122] : memref<8x32xf32, #tpu.memory_space<vmem>>, vector<8x4xf32>
    %cst_123 = arith.constant dense<0.000000e+00> : vector<8x8xf32>
    %165 = tpu.matmul %164, %162, %cst_123 {dimension_numbers = #tpu.dot_dimension_numbers<[1], [1], [0], [0], [0, 0, 1, 0], [], []>} : vector<8x4xf32>, vector<8x4xf32>, vector<8x8xf32> -> vector<8x8xf32>
    %cst_124 = arith.constant dense<0xFF800000> : vector<8xf32>
    %166 = vector.multi_reduction <maximumf>, %165, %cst_124 [1] : vector<8x8xf32> to vector<8xf32>
    %167 = vector.shape_cast %166 : vector<8xf32> to vector<8x1xf32>
    %168 = vector.broadcast %167 : vector<8x1xf32> to vector<8x8xf32>
    %169 = arith.subf %165, %168 : vector<8x8xf32>
    %170 = math.exp %169 : vector<8x8xf32>
    %cst_125 = arith.constant dense<0.000000e+00> : vector<8xf32>
    %171 = vector.multi_reduction <add>, %170, %cst_125 [1] : vector<8x8xf32> to vector<8xf32>
    %172 = vector.shape_cast %171 : vector<8xf32> to vector<8x1xf32>
    %cst_126 = arith.constant dense<0.000000e+00> : vector<8x4xf32>
    %173 = tpu.matmul %170, %163, %cst_126 {dimension_numbers = #tpu.dot_dimension_numbers<[1], [0], [0], [1], [0, 0, 1, 1], [], []>} : vector<8x8xf32>, vector<8x4xf32>, vector<8x4xf32> -> vector<8x4xf32>
    %174 = tpu.reciprocal %172 {approx = true} : vector<8x1xf32> -> vector<8x1xf32>
    %175 = vector.broadcast %174 : vector<8x1xf32> to vector<8x4xf32>
    %176 = arith.mulf %173, %175 : vector<8x4xf32>
    %c0_127 = arith.constant 0 : index
    %c28_128 = arith.constant 28 : index
    %177 = vector.load %arg9[%c0_127, %c28_128] : memref<8x32xf32, #tpu.memory_space<vmem>>, vector<8x4xf32>
    tpu.vector_store %arg9[%c0_127, %c28_128], %176 {strides = array<i32>} : memref<8x32xf32, #tpu.memory_space<vmem>>, vector<8x4xf32>,
    %c0_129 = arith.constant 0 : index
    %c0_130 = arith.constant 0 : index
    %178 = vector.load %arg9[%c0_129, %c0_130] : memref<8x32xf32, #tpu.memory_space<vmem>>, vector<8x32xf32>
    %c3 = arith.constant 3 : index
    %c0_131 = arith.constant 0 : index
    %c0_132 = arith.constant 0 : index
    %179 = vector.load %arg2[%c3, %c0_131, %c0_132] : memref<4x32x32xf32, #tpu.memory_space<vmem>>, vector<1x32x32xf32>
    %180 = vector.shape_cast %179 : vector<1x32x32xf32> to vector<32x32xf32>
    %cst_133 = arith.constant dense<0.000000e+00> : vector<8x32xf32>
    %181 = tpu.matmul %178, %180, %cst_133 {dimension_numbers = #tpu.dot_dimension_numbers<[1], [0], [0], [1], [0, 0, 1, 1], [], []>} : vector<8x32xf32>, vector<32x32xf32>, vector<8x32xf32> -> vector<8x32xf32>
    %c0_134 = arith.constant 0 : index
    %c0_135 = arith.constant 0 : index
    %182 = vector.load %arg3[%c0_134, %c0_135] : memref<1x32xf32, #tpu.memory_space<vmem>>, vector<1x32xf32>
    %183 = vector.broadcast %182 : vector<1x32xf32> to vector<8x32xf32>
    %184 = arith.addf %181, %183 : vector<8x32xf32>
    %c0_136 = arith.constant 0 : index
    %c0_137 = arith.constant 0 : index
    %c0_138 = arith.constant 0 : index
    %185 = vector.load %arg4[%c0_136, %c0_137, %c0_138] : memref<1x8x32xf32, #tpu.memory_space<vmem>>, vector<1x8x32xf32>
    %186 = vector.shape_cast %185 : vector<1x8x32xf32> to vector<8x32xf32>
    %187 = vector.shape_cast %184 : vector<8x32xf32> to vector<1x8x32xf32>
    tpu.vector_store %arg4[%c0_136, %c0_137, %c0_138], %187 {strides = array<i32>} : memref<1x8x32xf32, #tpu.memory_space<vmem>>, vector<1x8x32xf32>,
    return
  }
  func.func @transform_0(%arg0: i32) -> (i32, i32, i32) {
    %c0_i32 = arith.constant 0 : i32
    %c0_i32_0 = arith.constant 0 : i32
    %c0_i32_1 = arith.constant 0 : i32
    return %arg0, %c0_i32, %c0_i32_0 : i32, i32, i32
  }
  func.func @transform_1(%arg0: i32) -> (i32, i32, i32) {
    %c0_i32 = arith.constant 0 : i32
    %c0_i32_0 = arith.constant 0 : i32
    %c0_i32_1 = arith.constant 0 : i32
    %c0_i32_2 = arith.constant 0 : i32
    return %c0_i32, %c0_i32_0, %c0_i32_1 : i32, i32, i32
  }
  func.func @transform_2(%arg0: i32) -> (i32, i32) {
    %c0_i32 = arith.constant 0 : i32
    %c0_i32_0 = arith.constant 0 : i32
    %c0_i32_1 = arith.constant 0 : i32
    return %c0_i32, %c0_i32_0 : i32, i32
  }
  func.func @transform_3(%arg0: i32) -> (i32, i32, i32) {
    %c0_i32 = arith.constant 0 : i32
    %c0_i32_0 = arith.constant 0 : i32
    %c0_i32_1 = arith.constant 0 : i32
    return %arg0, %c0_i32, %c0_i32_0 : i32, i32, i32
  }
  func.func @transform_4(%arg0: i32) -> (i32, i32, i32) {
    %c0_i32 = arith.constant 0 : i32
    %c0_i32_0 = arith.constant 0 : i32
    %c0_i32_1 = arith.constant 0 : i32
    return %arg0, %c0_i32, %c0_i32_0 : i32, i32, i32
  }
}

</mosaic_0001>

<bundles_post_ra>
// kernel: tpu_custom_call.1
= control target key start
LH: loop header
LB: loop body
LE: loop exit
PB: predicated region body
PF: predicated region fallthrough
CT: control target
= control target key end

     0   :  { %10 = vsyncpa [#allocation7], 0  ;;  %s3180_s0 = inlined_call_operand.hbm [shape: f32[2,8,32], index: 0, kind: input, shape index: {}]   ;;  %s3181_s1 = inlined_call_operand.hbm [shape: f32[4,32,32], index: 1, kind: input, shape index: {}]   ;;  %s3182_s2 = inlined_call_operand.vmem [shape: f32[1,32], index: 2, kind: input, shape index: {}]   ;;  %s3183_s3 = inlined_call_operand.hbm [shape: f32[2,8,32], index: 3, kind: output, shape index: {0}]   ;;  %s3184_s4 = inlined_call_operand.vmem [shape: f32[2,3,8], index: 4, kind: output, shape index: {1}]  }
   0x1   :  { %12 = vsyncpa [#allocation7 + $0x1], 0 }
   0x2   :  { %13 = vsyncpa [#allocation10], 0 }
   0x3   :  { %14 = vsyncpa [#allocation8], 0 }
   0x4   :  { %16 = vsyncpa [#allocation8 + $0x1], 0  ;;  %s2827_s15 = smov 0   ;;  %s2829_s16 = smov 0  }
   0x5   :  { %s2831_s17 = smov 0   ;;  %s2833_s18 = smov 0  }
   0x6 LB: > { %s2848_s19 = sadd.s32 4294967295, %s2778_s18   ;;  %s2270_s20 = sadd.s32 4294967294, %s2778_s18   ;;  %s2778_s18 = sphi %s2833_s18, %s3204_s18   ;;  %s2774_s17 = sphi %s2831_s17, %s3203_s17   ;;  %s2770_s16 = sphi %s2829_s16, %s3202_s16   ;;  %s2766_s15 = sphi %s2827_s15, %s3201_s15  }
   0x7   : > { %p42_p0 = scmp.ne.s32.totalorder %s2770_s16, %s2766_s15  ;;  %p3185_p1 = scmp.eq.s32.totalorder %s2848_s19, 0 }
   0x8   : > { %p114_p3 = scmp.eq.s32.totalorder %s2270_s20, 1  ;;  %p2271_p5 = scmp.ge.s32.totalorder %s2778_s18, 1 }
   0x9   : > { %p2857_p4 = por %p3185_p1, %p42_p0  ;;  %p147_p7 = scmp.lt.s32.totalorder %s2778_s18, 3 }
   0xa   : > { %p2862_p6 = por %p114_p3, %p42_p0  ;;  %s2780_s24 = smov [#allocation9]  }
   0xb   : > { %s3188_s21 = scalar_select %p2857_p4, 1, 0 }
   0xc   : > { %s3189_s22 = scalar_select %p2862_p6, 1, 0 }
   0xd   : > { %p2867_p8 = pnand %p2271_p5, %p147_p7  ;;  %s159_s25 = sshll.u32 %s2780_s24, 4  ;;  %s2871_s25 = int_to_ptr.vmem [resolvable:$true] %s159_s25 }
   0xe   : > { %s2883_s27 = sadd.s32 1, %s2778_s18   ;;  %s29_s28 = sadd.s32 1, %s2774_s17 }
   0xf   : > { %s3190_s23 = scalar_select %p2867_p8, 1, 0 }
  0x10   : > { %p2542_p9 = pneg %p2867_p8  ;;  %s26_s29 = ssub.s32 %s2778_s18, %s2883_s27 }
  0x11   : > { %s2650_s6 = scalar_lea.hbm %s3181_s1, 2048 }
  0x12   : > { %p2878_p11 = pnand %p2542_p9, %p3185_p1  ;;  %p2651_p12 = scmp.ne.s32.totalorder %s3181_s1, %s2650_s6 }
  0x13   : > { %p2657_p5 = scmp.lt.u32.totalorder %s2650_s6, %s3181_s1 }
  0x14   : > { %p2652_p13 = pneg %p2878_p11 }
  0x16   : > { %p2653_p0 = pnand %p2652_p13, %p2651_p12 }
  0x18   : > { %p2654_p3 = pneg %p2653_p0 }
  0x1a   : > { %p2659_p7 = pnand %p2657_p5, %p2654_p3 }
  0x1c   : > { %2662 = shalt.err (!%p2659_p7)
}
  0x1d   : > { %s2663_s11 = scalar_lea.vmem %s2871_s25, 2048  ;;  %p2671_p2 = scmp.lt.s32.totalorder %s2871_s25, %s2871_s25 }
  0x1e   : > { %p2664_p9 = scmp.ne.s32.totalorder %s2871_s25, %s2663_s11  ;;  %p2672_p6 = scmp.lt.s32.totalorder %s2663_s11, %s2663_s11 }
  0x20   : > { %p2666_p10 = pnand %p2664_p9, %p2652_p13  ;;  %p2673_p4 = por %p2672_p6, %p2671_p2 }
  0x22   : > { %p2667_p1 = pneg %p2666_p10 }
  0x24   : > { %p2674_p8 = pnand %p2673_p4, %p2667_p1 }
  0x26   : > { %2677 = shalt.err (!%p2674_p8)
}
  0x27   : > { %s2781_s12 = smov 128   ;;  %s2782_s13 = smov 8  }
  0x28   : > { %2545 = dma.hbm_to_vmem [thread:$0]  (!%p2878_p11), %s3181_s1, 2048, %s2871_s25, [#allocation10], %s2781_s12, %s2781_s12, %s2782_s13  }
  0x29   : > { %p27_p2 = scmp.eq.s32.totalorder %s26_s29, 0  ;;  %p36_p1 = scmp.ne.s32.totalorder %s2774_s17, %s2770_s16 }
  0x2a   : > { %p37_p4 = scmp.eq.s32.totalorder %s2778_s18, 0  ;;  %p2555_p6 = scmp.lt.s32.totalorder %s2778_s18, 2 }
  0x2b   : > { %s2914_s24 = scalar_select %p27_p2, %s2774_s17, %s29_s28  }
  0x2c   : > { %p38_p8 = por %p37_p4, %p36_p1  ;;  %p3192_p10 = scmp.eq.s32.totalorder %s2848_s19, 1 }
  0x2d   : > { %s176_s5 = sand.u32 1, %s2774_s17   ;;  %s2275_s6 = sshll.u32 %s2778_s18, 7 }
  0x2e   : > { %p2918_p12 = por %p3192_p10, %p36_p1  ;;  %s2274_s7 = sshll.u32 %s176_s5, 3 }
  0x2f   : > { %s2927_s9 = scalar_lea.hbm %s3180_s0, %s2275_s6  ;;  %s180_s25 = scalar_lea.vmem [#allocation6], %s2274_s7 }
  0x30   : > { %s187_s28 = sshll.u32 %s180_s25, 4  ;;  %p2929_p11 = pnand %p2555_p6, %p38_p8  ;;  %s2933_s28 = int_to_ptr.vmem [resolvable:$true] %s187_s28 }
  0x31   : > { %s177_s10 = scalar_lea.sflag [#allocation7], %s176_s5  ;;  %s2678_s11 = scalar_lea.hbm %s2927_s9, 128 }
  0x32   : > { %p2679_p13 = scmp.ne.s32.totalorder %s2927_s9, %s2678_s11  ;;  %p2680_p0 = pneg %p2929_p11 }
  0x33   : > { %s2683_s14 = scalar_lea.hbm %s3180_s0, 256  ;;  %p2684_p7 = scmp.lt.u32.totalorder %s2927_s9, %s3180_s0 }
  0x34   : > { %p2681_p3 = pnand %p2680_p0, %p2679_p13  ;;  %p2685_p9 = scmp.lt.u32.totalorder %s2683_s14, %s2678_s11 }
  0x35   : > { %p2687_p1 = scmp.lt.u32.totalorder %s2678_s11, %s2927_s9 }
  0x36   : > { %p2682_p5 = pneg %p2681_p3  ;;  %p2686_p2 = por %p2685_p9, %p2684_p7 }
  0x38   : > { %p2688_p4 = por %p2687_p1, %p2686_p2 }
  0x3a   : > { %p2689_p6 = pnand %p2688_p4, %p2682_p5 }
  0x3c   : > { %2692 = shalt.err (!%p2689_p6)
}
  0x3d   : > { %s2693_s5 = scalar_lea.vmem %s2933_s28, 128  ;;  %s2783_s7 = smov [#allocation6]  }
  0x3e   : > { %p2694_p8 = scmp.ne.s32.totalorder %s2933_s28, %s2693_s5  ;;  %s2698_s26 = sshll.u32 %s2783_s7, 4  ;;  %s2699_s26 = int_to_ptr.vmem [resolvable:$false] %s2698_s26 }
  0x3f   : > { %s2700_s8 = scalar_lea.vmem %s2699_s26, 256  ;;  %p2701_p3 = scmp.lt.s32.totalorder %s2933_s28, %s2699_s26 }
  0x40   : > { %p2696_p10 = pnand %p2694_p8, %p2680_p0  ;;  %p2702_p7 = scmp.lt.s32.totalorder %s2700_s8, %s2693_s5 }
  0x42   : > { %p2697_p13 = pneg %p2696_p10  ;;  %p2703_p9 = por %p2702_p7, %p2701_p3 }
  0x44   : > { %p2704_p2 = pnand %p2703_p9, %p2697_p13 }
  0x46   : > { %2707 = shalt.err (!%p2704_p2)
}
  0x47   : > { %2549 = dma.hbm_to_vmem [thread:$0]  (!%p2929_p11), %s2927_s9, 128, %s2933_s28, %s177_s10  }
  0x48   : > { %p3195_p5 = scmp.ne.s32.totalorder %s3190_s23, 0 }
  0x49   : > { %s2963_s25 = sand.u32 (!%p3195_p5), 1, %s2770_s16   ;;  %p3196_p0 = scmp.ne.s32.totalorder (!%p3195_p5), %s3188_s21, 0 }
  0x4a   : > { %196 = sbr.rel (%p3195_p5) target bundleno = 1422 (0x58e), region = 32  ;;  %s2277_s11 = sshll.u32 (!%p3195_p5), %s2963_s25, 3 }
  0x4b   : > { %s199_s12 = scalar_lea.sflag (!%p3195_p5), [#allocation7], %s2963_s25  ;;  %s202_s13 = scalar_lea.vmem (!%p3195_p5), [#allocation6], %s2277_s11 }
  0x51   : > { %2753 = dma.done.wait (%p3196_p0), %s199_s12, 128  }
  0x52   : > { %2755 = vsyncadd (%p3196_p0), %s199_s12, 4294967168  ;;  %p3197_p11 = scmp.eq.s32.totalorder %s2848_s19, 0 }
  0x54   : > { %2757 = dma.done.wait (%p3197_p11), [#allocation10], 2048   ;;  %p3198_p1 = pmov %p3197_p11 }
  0x55   : > { %v2784_v0 = vmov 0.0|0.0   ;;  %vm2785_vm0 = vmmov 0   ;;  %v2786_v1 = vmov 0.0   ;;  %v240_v2 = vld [vmem:[#allocation9] sm:$0xff]  ;;  %v241_v3 = vld [vmem:[#allocation9 + $0x8] sm:$0xff]  ;;  %v242_v7 = vld [vmem:[#allocation9 + $0x10] sm:$0xff] }
  0x56   : > { %2759 = vsyncadd (%p3198_p1), [#allocation10], 4294965248  ;;  %2510 = vmatprep.subr.bf16.mxu0 %v2784_v0  ;;  %2516 = vmatprep.subr.bf16.mxu1 %v2784_v0  ;;  %v321_v4 = vld [vmem:[#allocation9 + $0x20] sm:$0xff]  ;;  %v2511_v5 = vpack.c.bf16 %v241_v3, %v240_v2  ;;  %v322_v6 = vld [vmem:[#allocation9 + $0x28] sm:$0xff]  ;;  %vm244_vm1 = vcmask 261120   ;;  %s2787_s21 = smov 120  }
  0x57   : > { %2384 = vmatprep.mubr.msk.f32.mxu0 %vm2785_vm0, %v2786_v1  ;;  %2395 = vmatprep.mubr.msk.f32.mxu1 %vm2785_vm0, %v2786_v1  ;;  %v243_v8 = vld [vmem:[#allocation9 + $0x18] sm:$0xff]  ;;  %v2517_v9 = vpack.c.bf16 %v322_v6, %v321_v4  ;;  %v323_v10 = vld [vmem:[#allocation9 + $0x30] sm:$0xff]  ;;  %v397_v15 = vld [vmem:[#allocation9 + $0x40] sm:$0xff]  ;;  %s2788_s23 = smov 124   ;;  %vm656_vm2 = vcmask 31744   ;;  %s2789_s9 = smov 116  }
  0x58   : > { %v324_v11 = vld [vmem:[#allocation9 + $0x38] sm:$0xff]  ;;  %2512 = vmatpush3.bf16.msra.mxu0 %v2511_v5  ;;  %v2514_v12 = vpack.c.bf16 %v243_v8, %v242_v7  ;;  %v398_v16 = vld [vmem:[#allocation9 + $0x48] sm:$0xff]  ;;  %v399_v17 = vld [vmem:[#allocation9 + $0x50] sm:$0xff]  ;;  %s2790_s28 = smov 112   ;;  %s2791_s29 = smov 108   ;;  %vm733_vm3 = vcmask 64512  }
  0x59   : > { %2518 = vmatpush3.bf16.msra.mxu1 %v2517_v9  ;;  %2513 = vmatprep.subr.bf16.mxu0 %v2784_v0  ;;  %v2520_v13 = vpack.c.bf16 %v324_v11, %v323_v10  ;;  %v239_v14 = vld [vmem:[%s202_s13] sm:$0xff]  ;;  %v2523_v18 = vpack.c.bf16 %v398_v16, %v397_v15  ;;  %s2792_s10 = smov 104   ;;  %s2793_s14 = smov 100   ;;  %vm561_vm4 = vcmask 58368   ;;  %vm563_vm5 = vcmask 57344  }
  0x5a   : > { %2519 = vmatprep.subr.bf16.mxu1 %v2784_v0  ;;  %v400_v19 = vld [vmem:[#allocation9 + $0x58] sm:$0xff]  ;;  %p235_p4 = scmp.lt.s32.totalorder %s2848_s19, 1  ;;  %vm646_vm6 = vcmask 15360   ;;  %s2794_s8 = smov 4   ;;  %vm994_vm7 = vcmask 64544   ;;  %vm1171_vm8 = vcmask 97344  }
  0x5b   : > { %v2526_v20 = vpack.c.bf16 %v400_v19, %v399_v17  ;;  %s2795_s12 = smov 8   ;;  %s2796_s13 = smov 12   ;;  %vm1348_vm9 = vcmask 130144   ;;  %vm1525_vm10 = vcmask 162944   ;;  %vm1702_vm11 = vcmask 195744  }
  0x5c   : > { %2515 = vmatpush3.bf16.msra.mxu0 %v2514_v12  ;;  %s236_s20 = scalar_select %p235_p4, %s2848_s19, 1  ;;  %vm1879_vm12 = vcmask 228544   ;;  %vm2056_vm13 = vcmask 261344  }
  0x5d   : > { %2521 = vmatpush3.bf16.msra.mxu1 %v2520_v13  ;;  %2522 = vmatprep.subr.bf16.mxu0 %v2784_v0 }
  0x5e   : > { %2409 = vmatprep.subr.mxu1 %v2786_v1  ;;  %s2280_s6 = sshll.u32 %s236_s20, 2  ;;  %s228_s20 = scalar_lea.vmem [#allocation11], %s2277_s11 }
  0x5f   : > { %2385 = vmatmul.mubr.msk.f32.vlgmr.msra.gmra.mrb[0].mxu0 %vm244_vm1, %v239_v14  ;;  %s238_s26 = scalar_lea.vmem %s3184_s4, %s2280_s6  ;;  %s2163_s6 = sshll.u32 %s228_s20, 4  ;;  %s3137_s6 = int_to_ptr.vmem [resolvable:$true] %s2163_s6 }
  0x60   : > { %2396 = vmatmul.mubr.msk.f32.vlgmr.msra.gmra.mrb[0].mxu1 %vm244_vm1, %v239_v14  ;;  %2406 = vmatprep.mubr.msk.f32.mxu0 %vm2785_vm0, %v2786_v1  ;;  %s2801_s11 = smov [#allocation11]  }
  0x61   : > { %2411 = vmatprep.mubr.msk.f32.mxu1 %vm2785_vm0, %v2786_v1  ;;  %2524 = vmatpush3.bf16.msra.mxu0 %v2523_v18 }
  0x62   : > { %2525 = vmatprep.subr.bf16.mxu0 %v2784_v0 }
  0x65   : > { %2527 = vmatpush3.bf16.msra.mxu0 %v2526_v20 }
  0x66   : > { %2429 = vmatprep.subr.mxu0 %v2786_v1 }
  0x68   : > { %2407 = vmatmul.mubr.msk.f32.vlgmr.msra.gmra.mrb[2].mxu0 %vm244_vm1, %v239_v14 }
  0x69   : > { %2431 = vmatprep.mubr.msk.f32.mxu0 %vm2785_vm0, %v2786_v1 }
 0x132   : > { %v314_v21 = vpop.f32.mrb[0].mxu0 }
 0x133   : > { %v318_v22 = vmul.f32 0.5, %v314_v21  ;;  %v391_v23 = vpop.f32.mrb[0].mxu1  ;;  %v2386_v24 = vpop.f32.mrb[1].mxu0 }
 0x134   : > { %395 = vst.msk [vmem:[#allocation3] sm:$0xff] %vm244_vm1, %v391_v23  ;;  %v2397_v25 = vpop.f32.mrb[1].mxu1 }
 0x135   : > { %319 = vst.msk [vmem:[#allocation2] sm:$0xff] %vm244_vm1, %v318_v22 }
 0x13b   : > { %v996_v26 = vld [vmem:[#allocation3] sm:$0xff]  ;;  %v467_v33 = vpop.f32.mrb[2].mxu0 }
 0x13c   : > { %1003 = vrot.lane.b32.xlu1 %v996_v26, %s2787_s21  ;;  %826 = vrot.lane.b32.xlu0 %v996_v26, %s2788_s23  ;;  %v472_v27 = vld [vmem:[#allocation2 + $0x6] sm:$0x3]  ;;  %471 = vst.msk [vmem:[#allocation4] sm:$0xff] %vm244_vm1, %v467_v33  ;;  %v2408_v35 = vpop.f32.mrb[3].mxu0 }
 0x13d   : > { %2410 = vmatpush3.xpose.msk.msra.mxu1 %vm244_vm1, %v996_v26  ;;  %v998_v28 = vld [vmem:[#allocation2] sm:$0xff] }
 0x13e   : > { %2414 = vmatprep.subr.mxu1 %v2786_v1 }
 0x140   : > { %2412 = vmatmul.mubr.msk.f32.vlgmr.msra.gmra.mrb[2].mxu1 %vm244_vm1, %v472_v27  ;;  %1000 = vrot.lane.b32.xlu1 %v998_v28, %s2787_s21 }
 0x141   : > { %823 = vrot.lane.b32.xlu0 %v998_v28, %s2788_s23  ;;  %2415 = vmatpush3.xpose.msk.msra.mxu1 %vm244_vm1, %v472_v27 }
 0x142   : > { %2416 = vmatprep.mubr.msk.f32.mxu1 %vm2785_vm0, %v2786_v1  ;;  %2419 = vmatprep.subr.mxu1 %v2786_v1 }
 0x144   : > { %2417 = vmatmul.mubr.msk.f32.vlgmr.msra.gmra.mrb[4].mxu1 %vm244_vm1, %v996_v26  ;;  %1177 = vrot.lane.b32.xlu1 %v998_v28, %s2789_s9 }
 0x145   : > { %1180 = vrot.lane.b32.xlu0 %v996_v26, %s2789_s9  ;;  %2420 = vmatpush3.xpose.msk.msra.mxu1 %vm656_vm2, %v996_v26 }
 0x146   : > { %2421 = vmatprep.mubr.msk.f32.mxu1 %vm2785_vm0, %v2786_v1  ;;  %2424 = vmatprep.subr.mxu1 %v2786_v1 }
 0x148   : > { %2422 = vmatmul.mubr.msk.f32.vlgmr.msra.gmra.mrb[6].mxu1 %vm656_vm2, %v998_v28  ;;  %1354 = vrot.lane.b32.xlu1 %v998_v28, %s2790_s28 }
 0x149   : > { %1357 = vrot.lane.b32.xlu0 %v996_v26, %s2790_s28  ;;  %2426 = vmatprep.mubr.msk.f32.mxu1 %vm2785_vm0, %v2786_v1 }
 0x14c   : > { %1531 = vrot.lane.b32.xlu1 %v998_v28, %s2791_s29 }
 0x14d   : > { %1534 = vrot.lane.b32.xlu0 %v996_v26, %s2791_s29 }
 0x150   : > { %1708 = vrot.lane.b32.xlu1 %v998_v28, %s2792_s10 }
 0x151   : > { %1711 = vrot.lane.b32.xlu0 %v996_v26, %s2792_s10 }
 0x154   : > { %1885 = vrot.lane.b32.xlu1 %v998_v28, %s2793_s14  ;;  %v650_v28 = vld [vmem:[#allocation4] sm:$0xff] }
 0x155   : > { %1888 = vrot.lane.b32.xlu0 %v996_v26, %s2793_s14 }
 0x1ae   : > { %v1004_v29 = vpop.permute.xlu1 %1003  ;;  %v827_v30 = vpop.permute.xlu0 %826 }
 0x1af   : > { %2430 = vmatpush3.xpose.msk.msra.mxu0 %vm656_vm2, %v827_v30 }
 0x1b0   : > { %2439 = vmatprep.subr.mxu0 %v2786_v1 }
 0x1b2   : > { %v1001_v31 = vpop.permute.xlu1 %1000 }
 0x1b3   : > { %v824_v32 = vpop.permute.xlu0 %823 }
 0x1b4   : > { %2432 = vmatmul.mubr.msk.f32.vlgmr.msra.gmra.mrb[4].mxu0 %vm656_vm2, %v824_v32 }
 0x1b5   : > { %2440 = vmatpush3.xpose.msk.msra.mxu0 %vm656_vm2, %v1004_v29  ;;  %2441 = vmatprep.mubr.msk.f32.mxu0 %vm2785_vm0, %v2786_v1 }
 0x1b6   : > { %v1178_v34 = vpop.permute.xlu1 %1177  ;;  %2449 = vmatprep.subr.mxu0 %v2786_v1 }
 0x1b7   : > { %v1181_v36 = vpop.permute.xlu0 %1180 }
 0x1b8   : > { %2442 = vmatmul.mubr.msk.f32.vlgmr.msra.gmra.mrb[6].mxu0 %vm656_vm2, %v1001_v31 }
 0x1b9   : > { %2450 = vmatpush3.xpose.msk.msra.mxu0 %vm656_vm2, %v1181_v36  ;;  %2451 = vmatprep.mubr.msk.f32.mxu0 %vm2785_vm0, %v2786_v1 }
 0x1ba   : > { %v1355_v37 = vpop.permute.xlu1 %1354  ;;  %2459 = vmatprep.subr.mxu0 %v2786_v1 }
 0x1bb   : > { %v1358_v38 = vpop.permute.xlu0 %1357 }
 0x1bc   : > { %2452 = vmatmul.mubr.msk.f32.vlgmr.msra.gmra.mrb[8].mxu0 %vm656_vm2, %v1178_v34 }
 0x1bd   : > { %2460 = vmatpush3.xpose.msk.msra.mxu0 %vm656_vm2, %v1358_v38  ;;  %2461 = vmatprep.mubr.msk.f32.mxu0 %vm2785_vm0, %v2786_v1 }
 0x1be   : > { %2469 = vmatprep.subr.mxu0 %v2786_v1  ;;  %v1532_v39 = vpop.permute.xlu1 %1531 }
 0x1bf   : > { %v1535_v40 = vpop.permute.xlu0 %1534 }
 0x1c0   : > { %2462 = vmatmul.mubr.msk.f32.vlgmr.msra.gmra.mrb[10].mxu0 %vm656_vm2, %v1355_v37 }
 0x1c1   : > { %2470 = vmatpush3.xpose.msk.msra.mxu0 %vm656_vm2, %v1535_v40  ;;  %2471 = vmatprep.mubr.msk.f32.mxu0 %vm2785_vm0, %v2786_v1 }
 0x1c2   : > { %2479 = vmatprep.subr.mxu0 %v2786_v1  ;;  %v1709_v42 = vpop.permute.xlu1 %1708 }
 0x1c3   : > { %v1712_v41 = vpop.permute.xlu0 %1711 }
 0x1c4   : > { %2472 = vmatmul.mubr.msk.f32.vlgmr.msra.gmra.mrb[12].mxu0 %vm656_vm2, %v1532_v39 }
 0x1c5   : > { %2480 = vmatpush3.xpose.msk.msra.mxu0 %vm656_vm2, %v1712_v41  ;;  %2481 = vmatprep.mubr.msk.f32.mxu0 %vm2785_vm0, %v2786_v1 }
 0x1c6   : > { %2489 = vmatprep.subr.mxu0 %v2786_v1  ;;  %v1886_v44 = vpop.permute.xlu1 %1885 }
 0x1c7   : > { %v1889_v43 = vpop.permute.xlu0 %1888 }
 0x1c8   : > { %2482 = vmatmul.mubr.msk.f32.vlgmr.msra.gmra.mrb[14].mxu0 %vm656_vm2, %v1709_v42 }
 0x1c9   : > { %2490 = vmatpush3.xpose.msk.msra.mxu0 %vm656_vm2, %v1889_v43  ;;  %2491 = vmatprep.mubr.msk.f32.mxu0 %vm2785_vm0, %v2786_v1 }
 0x1ca   : > { %2528 = vmatprep.subr.bf16.mxu0 %v2784_v0 }
 0x1cc   : > { %2492 = vmatmul.mubr.msk.f32.vlgmr.msra.gmra.mrb[16].mxu0 %vm656_vm2, %v1886_v44 }
 0x1cd   : > { %2507 = vmatprep.mubr.msk.f32.mxu0 %vm2785_vm0, %v2786_v1 }
 0x213   : > { %v546_v45 = vpop.f32.mrb[2].mxu1 }
 0x214   : > { %v2286_v46 = vmul.f32 -0.125, %v546_v45  ;;  %v2413_v47 = vpop.f32.mrb[3].mxu1 }
 0x216   : > { %v552_v48 = vmul.f32 1.442695, %v2286_v46 }
 0x217   : > { %v635_v49 = vpop.f32.mrb[4].mxu1 }
 0x218   : > { %2610 = vpow2.f32 %v552_v48  ;;  %v2289_v50 = vmul.f32 -0.125, %v635_v49  ;;  %v2418_v51 = vpop.f32.mrb[5].mxu1 }
 0x21a   : > { %v641_v52 = vmul.f32 1.442695, %v2289_v50 }
 0x21b   : > { %v729_v53 = vpop.f32.mrb[6].mxu1 }
 0x21c   : > { %2612 = vpow2.f32 %v641_v52  ;;  %v2423_v54 = vpop.f32.mrb[7].mxu1  ;;  %v734_v55 = vsel %vm733_vm3, %v729_v53, -inf }
 0x21d   : > { %735 = vmax.xlane.f32.xlu1 %v734_v55 }
 0x222   : > { %v2611_v56 = vpop.eup %2610 }
 0x223   : > { %v554_v57 = vadd.f32 1.0, %v2611_v56 }
 0x225   : > { %2614 = vrcp.f32 %v554_v57 }
 0x226   : > { %v2613_v58 = vpop.eup %2612 }
 0x227   : > { %v643_v59 = vadd.f32 1.0, %v2613_v58 }
 0x229   : > { %2616 = vrcp.f32 %v643_v59 }
 0x22f   : > { %v2615_v60 = vpop.eup %2614 }
 0x230   : > { %v558_v61 = vrot.slane %v2615_v60, 1  ;;  %562 = vst.msk [vmem:[%s238_s26] sm:$0x3] %vm561_vm4, %v2615_v60 }
 0x232   : > { %v560_v62 = vmax.f32 %v2615_v60, %v558_v61 }
 0x233   : > { %v2617_v63 = vpop.eup %2616 }
 0x234   : > { %564 = vst.msk [vmem:[%s238_s26 + $0x2] sm:$0x1] %vm563_vm5, %v560_v62  ;;  %v647_v2 = vsel %vm646_vm6, %v2617_v63, -inf }
 0x235   : > { %648 = vmax.xlane.f32.xlu0 %v647_v2 }
 0x287   : > { %v898_v3 = vpop.f32.mrb[4].mxu0 }
 0x288   : > { %v2433_v4 = vpop.f32.mrb[5].mxu0  ;;  %v902_v5 = vsel %vm733_vm3, %v898_v3, -inf }
 0x289   : > { %903 = vmax.xlane.f32.xlu0 %v902_v5 }
 0x28b   : > { %v1075_v6 = vpop.f32.mrb[6].mxu0 }
 0x28c   : > { %v2443_v7 = vpop.f32.mrb[7].mxu0  ;;  %v1079_v8 = vsel %vm733_vm3, %v1075_v6, -inf }
 0x28d   : > { %1080 = vmax.xlane.f32.xlu0 %v1079_v8 }
 0x28f   : > { %v1252_v9 = vpop.f32.mrb[8].mxu0 }
 0x290   : > { %v2453_v10 = vpop.f32.mrb[9].mxu0  ;;  %v1256_v11 = vsel %vm733_vm3, %v1252_v9, -inf }
 0x291   : > { %1257 = vmax.xlane.f32.xlu1 %v1256_v11 }
 0x293   : > { %v1429_v12 = vpop.f32.mrb[10].mxu0 }
 0x294   : > { %v2463_v13 = vpop.f32.mrb[11].mxu0  ;;  %v1433_v14 = vsel %vm733_vm3, %v1429_v12, -inf }
 0x295   : > { %1434 = vmax.xlane.f32.xlu0 %v1433_v14 }
 0x297   : > { %v1606_v15 = vpop.f32.mrb[12].mxu0 }
 0x298   : > { %v2473_v16 = vpop.f32.mrb[13].mxu0  ;;  %v1610_v17 = vsel %vm733_vm3, %v1606_v15, -inf }
 0x299   : > { %1611 = vmax.xlane.f32.xlu1 %v1610_v17 }
 0x29b   : > { %v1783_v18 = vpop.f32.mrb[14].mxu0 }
 0x29c   : > { %v2483_v19 = vpop.f32.mrb[15].mxu0  ;;  %v1787_v20 = vsel %vm733_vm3, %v1783_v18, -inf }
 0x29d   : > { %1788 = vmax.xlane.f32.xlu0 %v1787_v20 }
 0x29f   : > { %v1960_v21 = vpop.f32.mrb[16].mxu0 }
 0x2a0   : > { %v2493_v22 = vpop.f32.mrb[17].mxu0  ;;  %v1964_v23 = vsel %vm733_vm3, %v1960_v21, -inf }
 0x2a1   : > { %1965 = vmax.xlane.f32.xlu1 %v1964_v23 }
 0x2aa   : > { %v736_v24 = vpop.xlane.xlu1 %735 }
 0x2ab   : > { %v737_v25 = vsub.f32 %v729_v53, %v736_v24 }
 0x2ad   : > { %v738_v26 = vmul.f32 1.442695, %v737_v25 }
 0x2af   : > { %2618 = vpow2.f32 %v738_v26 }
 0x2b9   : > { %v2619_v31 = vpop.eup %2618 }
 0x2ba   : > { %v740_v4 = vsel %vm733_vm3, %v2619_v31, 0.0 }
 0x2c2   : > { %v649_v27 = vpop.xlane.xlu0 %648 }
 0x2c3   : > { %v651_v29 = vmul.f32 %v650_v28, %v649_v27 }
 0x2c5   : > { %652 = vst.msk [vmem:[#allocation4] sm:$0xff] %vm244_vm1, %v651_v29 }
 0x2cc   : > { %v654_v30 = vld [vmem:[#allocation4] sm:$0xff] }
 0x2cd   : > { %2425 = vmatpush3.msra.mxu1 %v654_v30  ;;  %912 = vrot.lane.b32.xlu0 %v654_v30, %s2788_s23  ;;  %s2798_s23 = smov 20  }
 0x2ce   : > { %1089 = vrot.lane.b32.xlu1 %v654_v30, %s2787_s21  ;;  %2427 = vmatmul.mubr.msk.f32.vlgmr.msra.gmra.mrb[8].mxu1 %vm733_vm3, %v2619_v31  ;;  %s2797_s21 = smov 16  }
 0x2cf   : > { %2434 = vmatprep.subr.mxu1 %v2786_v1  ;;  %2436 = vmatprep.mubr.msk.f32.mxu1 %vm2785_vm0, %v2786_v1 }
 0x2d1   : > { %1443 = vrot.lane.b32.xlu0 %v654_v30, %s2790_s28  ;;  %s2800_s28 = smov 28  }
 0x2d2   : > { %1266 = vrot.lane.b32.xlu1 %v654_v30, %s2789_s9  ;;  %s2799_s9 = smov 24  }
 0x2d5   : > { %1797 = vrot.lane.b32.xlu0 %v654_v30, %s2792_s10 }
 0x2d6   : > { %1620 = vrot.lane.b32.xlu1 %v654_v30, %s2791_s29 }
 0x2da   : > { %1974 = vrot.lane.b32.xlu1 %v654_v30, %s2793_s14  ;;  %s2317_s14 = sshll.u32 %s2848_s19, 7  ;;  %s2708_s19 = scalar_lea.vmem %s3137_s6, 128 }
 0x2db   : > { %s3135_s26 = scalar_lea.hbm %s3183_s3, %s2317_s14  ;;  %p2709_p6 = scmp.ne.s32.totalorder %s3137_s6, %s2708_s19 }
 0x2dd   : > { %p2710_p8 = pnand %p2709_p6, %p2918_p12 }
 0x2df   : > { %p2711_p10 = pneg %p2710_p8 }
 0x316   : > { %v904_v32 = vpop.xlane.xlu0 %903 }
 0x317   : > { %v905_v33 = vsub.f32 %v898_v3, %v904_v32 }
 0x319   : > { %v906_v34 = vmul.f32 1.442695, %v905_v33 }
 0x31a   : > { %v1081_v35 = vpop.xlane.xlu0 %1080 }
 0x31b   : > { %2620 = vpow2.f32 %v906_v34  ;;  %v1082_v36 = vsub.f32 %v1075_v6, %v1081_v35 }
 0x31d   : > { %v1083_v37 = vmul.f32 1.442695, %v1082_v36 }
 0x31e   : > { %v1258_v38 = vpop.xlane.xlu1 %1257 }
 0x31f   : > { %2622 = vpow2.f32 %v1083_v37  ;;  %v1259_v39 = vsub.f32 %v1252_v9, %v1258_v38 }
 0x321   : > { %v1260_v40 = vmul.f32 1.442695, %v1259_v39 }
 0x322   : > { %v1435_v41 = vpop.xlane.xlu0 %1434 }
 0x323   : > { %2624 = vpow2.f32 %v1260_v40  ;;  %v1436_v42 = vsub.f32 %v1429_v12, %v1435_v41  ;;  %v2060_v40 = vld [vmem:[#allocation9 + $0x60] sm:$0xff]  ;;  %v2061_v41 = vld [vmem:[#allocation9 + $0x68] sm:$0xff] }
 0x325   : > { %v2621_v43 = vpop.eup %2620  ;;  %v1437_v44 = vmul.f32 1.442695, %v1436_v42  ;;  %v2529_v42 = vpack.c.bf16 %v2061_v41, %v2060_v40 }
 0x326   : > { %v1612_v45 = vpop.xlane.xlu1 %1611  ;;  %v908_v46 = vsel %vm733_vm3, %v2621_v43, 0.0 }
 0x327   : > { %2626 = vpow2.f32 %v1437_v44  ;;  %v1613_v47 = vsub.f32 %v1606_v15, %v1612_v45  ;;  %909 = vadd.xlane.f32.xlu0 %v908_v46  ;;  %v2063_v44 = vld [vmem:[#allocation9 + $0x78] sm:$0xff]  ;;  %2530 = vmatpush3.bf16.msra.mxu0 %v2529_v42 }
 0x328   : > { %2531 = vmatprep.subr.bf16.mxu0 %v2784_v0 }
 0x329   : > { %v2623_v48 = vpop.eup %2622  ;;  %v1614_v49 = vmul.f32 1.442695, %v1613_v47 }
 0x32a   : > { %v1789_v50 = vpop.xlane.xlu0 %1788  ;;  %v1085_v51 = vsel %vm733_vm3, %v2623_v48, 0.0 }
 0x32b   : > { %2628 = vpow2.f32 %v1614_v49  ;;  %v1790_v52 = vsub.f32 %v1783_v18, %v1789_v50  ;;  %1086 = vadd.xlane.f32.xlu1 %v1085_v51 }
 0x32d   : > { %v2625_v53 = vpop.eup %2624  ;;  %v1791_v54 = vmul.f32 1.442695, %v1790_v52 }
 0x32e   : > { %v1966_v55 = vpop.xlane.xlu1 %1965  ;;  %v1262_v56 = vsel %vm733_vm3, %v2625_v53, 0.0 }
 0x32f   : > { %2630 = vpow2.f32 %v1791_v54  ;;  %v1967_v57 = vsub.f32 %v1960_v21, %v1966_v55  ;;  %1263 = vadd.xlane.f32.xlu0 %v1262_v56 }
 0x331   : > { %v2627_v58 = vpop.eup %2626  ;;  %v1968_v59 = vmul.f32 1.442695, %v1967_v57 }
 0x332   : > { %v1439_v60 = vsel %vm733_vm3, %v2627_v58, 0.0 }
 0x333   : > { %2632 = vpow2.f32 %v1968_v59  ;;  %1440 = vadd.xlane.f32.xlu0 %v1439_v60 }
 0x335   : > { %v2629_v61 = vpop.eup %2628 }
 0x336   : > { %v1616_v62 = vsel %vm733_vm3, %v2629_v61, 0.0 }
 0x337   : > { %1617 = vadd.xlane.f32.xlu1 %v1616_v62 }
 0x339   : > { %v2631_v63 = vpop.eup %2630 }
 0x33a   : > { %v1793_v2 = vsel %vm733_vm3, %v2631_v63, 0.0 }
 0x33b   : > { %1794 = vadd.xlane.f32.xlu0 %v1793_v2 }
 0x33d   : > { %v2633_v3 = vpop.eup %2632 }
 0x33e   : > { %v1970_v5 = vsel %vm733_vm3, %v2633_v3, 0.0 }
 0x33f   : > { %741 = vadd.xlane.f32.xlu0 %v740_v4  ;;  %v913_v6 = vpop.permute.xlu0 %912  ;;  %1971 = vadd.xlane.f32.xlu1 %v1970_v5 }
 0x340   : > { %v1090_v7 = vpop.permute.xlu1 %1089  ;;  %2435 = vmatpush3.msra.mxu1 %v913_v6 }
 0x341   : > { %2437 = vmatmul.mubr.msk.f32.vlgmr.msra.gmra.mrb[10].mxu1 %vm733_vm3, %v2621_v43  ;;  %2444 = vmatprep.subr.mxu1 %v2786_v1  ;;  %v2062_v43 = vld [vmem:[#allocation9 + $0x70] sm:$0xff] }
 0x342   : > { %2445 = vmatpush3.msra.mxu1 %v1090_v7  ;;  %2446 = vmatprep.mubr.msk.f32.mxu1 %vm2785_vm0, %v2786_v1  ;;  %v2532_v47 = vpack.c.bf16 %v2063_v44, %v2062_v43 }
 0x343   : > { %2454 = vmatprep.subr.mxu1 %v2786_v1  ;;  %v1444_v9 = vpop.permute.xlu0 %1443 }
 0x344   : > { %v1267_v8 = vpop.permute.xlu1 %1266  ;;  %2533 = vmatpush3.bf16.msra.mxu0 %v2532_v47 }
 0x345   : > { %2447 = vmatmul.mubr.msk.f32.vlgmr.msra.gmra.mrb[12].mxu1 %vm733_vm3, %v2623_v48 }
 0x346   : > { %2455 = vmatpush3.msra.mxu1 %v1267_v8  ;;  %2456 = vmatprep.mubr.msk.f32.mxu1 %vm2785_vm0, %v2786_v1 }
 0x347   : > { %2464 = vmatprep.subr.mxu1 %v2786_v1  ;;  %v1798_v11 = vpop.permute.xlu0 %1797 }
 0x348   : > { %v1621_v10 = vpop.permute.xlu1 %1620 }
 0x349   : > { %2457 = vmatmul.mubr.msk.f32.vlgmr.msra.gmra.mrb[14].mxu1 %vm733_vm3, %v2625_v53 }
 0x34a   : > { %2465 = vmatpush3.msra.mxu1 %v1444_v9  ;;  %2466 = vmatprep.mubr.msk.f32.mxu1 %vm2785_vm0, %v2786_v1 }
 0x34b   : > { %2474 = vmatprep.subr.mxu1 %v2786_v1 }
 0x34c   : > { %v1975_v12 = vpop.permute.xlu1 %1974 }
 0x34d   : > { %2467 = vmatmul.mubr.msk.f32.vlgmr.msra.gmra.mrb[16].mxu1 %vm733_vm3, %v2627_v58 }
 0x34e   : > { %2475 = vmatpush3.msra.mxu1 %v1621_v10  ;;  %2476 = vmatprep.mubr.msk.f32.mxu1 %vm2785_vm0, %v2786_v1 }
 0x34f   : > { %2484 = vmatprep.subr.mxu1 %v2786_v1 }
 0x351   : > { %2477 = vmatmul.mubr.msk.f32.vlgmr.msra.gmra.mrb[18].mxu1 %vm733_vm3, %v2629_v61 }
 0x352   : > { %2485 = vmatpush3.msra.mxu1 %v1798_v11  ;;  %2486 = vmatprep.mubr.msk.f32.mxu1 %vm2785_vm0, %v2786_v1 }
 0x353   : > { %2494 = vmatprep.subr.mxu1 %v2786_v1 }
 0x355   : > { %2487 = vmatmul.mubr.msk.f32.vlgmr.msra.gmra.mrb[20].mxu1 %vm733_vm3, %v2631_v63 }
 0x356   : > { %2495 = vmatpush3.msra.mxu1 %v1975_v12  ;;  %2496 = vmatprep.mubr.msk.f32.mxu1 %vm2785_vm0, %v2786_v1 }
 0x359   : > { %2497 = vmatmul.mubr.msk.f32.vlgmr.msra.gmra.mrb[22].mxu1 %vm733_vm3, %v2633_v3  ;;  %v2314_v3 = vld [vmem:[%s3182_s2] ss:$0 sm:$0xff] }
 0x3a1   : > { %v812_v13 = vpop.f32.mrb[8].mxu1 }
 0x3a2   : > { %v2428_v14 = vpop.f32.mrb[9].mxu1 }
 0x3b4   : > { %v910_v15 = vpop.xlane.xlu0 %909 }
 0x3b8   : > { %v1087_v22 = vpop.xlane.xlu1 %1086 }
 0x3bc   : > { %v1264_v16 = vpop.xlane.xlu0 %1263 }
 0x3c0   : > { %v1441_v17 = vpop.xlane.xlu0 %1440 }
 0x3c4   : > { %v1618_v26 = vpop.xlane.xlu1 %1617 }
 0x3c8   : > { %v1795_v18 = vpop.xlane.xlu0 %1794 }
 0x3cc   : > { %v742_v19 = vpop.xlane.xlu0 %741  ;;  %v1972_v35 = vpop.xlane.xlu1 %1971 }
 0x3cd   : > { %2634 = vrcp.f32 %v742_v19 }
 0x3ce   : > { %2636 = vrcp.f32 %v910_v15 }
 0x3cf   : > { %2638 = vrcp.f32 %v1087_v22 }
 0x3d0   : > { %2640 = vrcp.f32 %v1264_v16 }
 0x3d1   : > { %2642 = vrcp.f32 %v1441_v17 }
 0x3d2   : > { %2644 = vrcp.f32 %v1618_v26 }
 0x3d3   : > { %2646 = vrcp.f32 %v1795_v18 }
 0x3d4   : > { %2648 = vrcp.f32 %v1972_v35 }
 0x3d7   : > { %v2635_v20 = vpop.eup %2634 }
 0x3d8   : > { %v817_v21 = vmul.f32 %v2635_v20, %v812_v13  ;;  %v2637_v23 = vpop.eup %2636 }
 0x3d9   : > { %v2639_v27 = vpop.eup %2638 }
 0x3da   : > { %818 = vst.msk [vmem:[#allocation5] sm:$0xff] %vm656_vm2, %v817_v21  ;;  %v2641_v31 = vpop.eup %2640 }
 0x3db   : > { %v2643_v36 = vpop.eup %2642 }
 0x3dc   : > { %v2645_v45 = vpop.eup %2644 }
 0x3dd   : > { %v2647_v50 = vpop.eup %2646 }
 0x3de   : > { %v2649_v54 = vpop.eup %2648 }
 0x414   : > { %v984_v1 = vpop.f32.mrb[10].mxu1 }
 0x415   : > { %v989_v24 = vmul.f32 %v2637_v23, %v984_v1  ;;  %v2438_v25 = vpop.f32.mrb[11].mxu1 }
 0x417   : > { %991 = vrot.lane.b32.xlu1 %v989_v24, %s2794_s8  ;;  %s2146_s8 = scalar_lea.sflag [#allocation8], %s2963_s25 }
 0x418   : > { %v1161_v28 = vpop.f32.mrb[12].mxu1 }
 0x419   : > { %v1166_v29 = vmul.f32 %v2639_v27, %v1161_v28  ;;  %v2448_v30 = vpop.f32.mrb[13].mxu1 }
 0x41b   : > { %1168 = vrot.lane.b32.xlu0 %v1166_v29, %s2795_s12  ;;  %s2712_s12 = sshll.u32 %s2801_s11, 4  ;;  %s2713_s12 = int_to_ptr.vmem [resolvable:$false] %s2712_s12 }
 0x41c   : > { %v1338_v32 = vpop.f32.mrb[14].mxu1  ;;  %p2715_p13 = scmp.lt.s32.totalorder %s3137_s6, %s2713_s12 }
 0x41d   : > { %v1343_v33 = vmul.f32 %v2641_v31, %v1338_v32  ;;  %v2458_v34 = vpop.f32.mrb[15].mxu1 }
 0x41f   : > { %1345 = vrot.lane.b32.xlu1 %v1343_v33, %s2796_s13  ;;  %s2714_s13 = scalar_lea.vmem %s2713_s12, 256 }
 0x420   : > { %v1515_v37 = vpop.f32.mrb[16].mxu1  ;;  %p2716_p3 = scmp.lt.s32.totalorder %s2714_s13, %s2708_s19 }
 0x421   : > { %v1520_v38 = vmul.f32 %v2643_v36, %v1515_v37  ;;  %v2468_v39 = vpop.f32.mrb[17].mxu1 }
 0x422   : > { %p2717_p7 = por %p2716_p3, %p2715_p13 }
 0x423   : > { %1522 = vrot.lane.b32.xlu1 %v1520_v38, %s2797_s21 }
 0x424   : > { %v1692_v46 = vpop.f32.mrb[18].mxu1  ;;  %p2718_p9 = pnand %p2717_p7, %p2711_p10 }
 0x425   : > { %v1697_v48 = vmul.f32 %v2645_v45, %v1692_v46  ;;  %v2478_v49 = vpop.f32.mrb[19].mxu1 }
 0x427   : > { %1699 = vrot.lane.b32.xlu0 %v1697_v48, %s2798_s23 }
 0x428   : > { %v1869_v51 = vpop.f32.mrb[20].mxu1 }
 0x429   : > { %v1874_v52 = vmul.f32 %v2647_v50, %v1869_v51  ;;  %v2488_v53 = vpop.f32.mrb[21].mxu1 }
 0x42b   : > { %1876 = vrot.lane.b32.xlu1 %v1874_v52, %s2799_s9 }
 0x42c   : > { %v2046_v55 = vpop.f32.mrb[22].mxu1 }
 0x42d   : > { %v2051_v56 = vmul.f32 %v2649_v54, %v2046_v55  ;;  %v2498_v57 = vpop.f32.mrb[23].mxu1 }
 0x42f   : > { %2053 = vrot.lane.b32.xlu0 %v2051_v56, %s2800_s28 }
 0x489   : > { %v992_v58 = vpop.permute.xlu1 %991 }
 0x48a   : > { %995 = vst.msk [vmem:[#allocation5] sm:$0xff] %vm994_vm7, %v992_v58 }
 0x48d   : > { %v1169_v0 = vpop.permute.xlu0 %1168 }
 0x48e   : > { %1172 = vst.msk [vmem:[#allocation5] sm:$0xff] %vm1171_vm8, %v1169_v0 }
 0x491   : > { %v1346_v59 = vpop.permute.xlu1 %1345 }
 0x492   : > { %1349 = vst.msk [vmem:[#allocation5] sm:$0xff] %vm1348_vm9, %v1346_v59 }
 0x495   : > { %v1523_v60 = vpop.permute.xlu1 %1522 }
 0x496   : > { %1526 = vst.msk [vmem:[#allocation5] sm:$0xff] %vm1525_vm10, %v1523_v60 }
 0x499   : > { %v1700_v61 = vpop.permute.xlu0 %1699 }
 0x49a   : > { %1703 = vst.msk [vmem:[#allocation5] sm:$0xff] %vm1702_vm11, %v1700_v61 }
 0x49d   : > { %v1877_v62 = vpop.permute.xlu1 %1876 }
 0x49e   : > { %1880 = vst.msk [vmem:[#allocation5] sm:$0xff] %vm1879_vm12, %v1877_v62 }
 0x4a1   : > { %v2054_v63 = vpop.permute.xlu0 %2053 }
 0x4a2   : > { %2057 = vst.msk [vmem:[#allocation5] sm:$0xff] %vm2056_vm13, %v2054_v63 }
 0x4a9   : > { %v2058_v2 = vld [vmem:[#allocation5] sm:$0xff] }
 0x4aa   : > { %2508 = vmatmul.mubr.msk.f32.vlgmr.msra.gmra.mrb[18].mxu0 %vm244_vm1, %v2058_v2 }
 0x57d   : > { %v2140_v4 = vpop.f32.mrb[18].mxu0 }
 0x57e   : > { %v2141_v5 = vadd.f32 %v2314_v3, %v2140_v4  ;;  %v2509_v6 = vpop.f32.mrb[19].mxu0 }
 0x580   : > { %2144 = vst.msk [vmem:[%s228_s20] sm:$0xff] %vm244_vm1, %v2141_v5 }
 0x581   : > { %2721 = shalt.err (!%p2718_p9)
}
 0x582   : > { %s2722_s25 = scalar_lea.hbm %s3135_s26, 128  ;;  %s2726_s9 = scalar_lea.hbm %s3183_s3, 256 }
 0x583   : > { %p2723_p2 = scmp.ne.s32.totalorder %s3135_s26, %s2722_s25  ;;  %p2727_p11 = scmp.lt.u32.totalorder %s3135_s26, %s3183_s3 }
 0x584   : > { %p2728_p1 = scmp.lt.u32.totalorder %s2726_s9, %s2722_s25  ;;  %p2730_p6 = scmp.lt.u32.totalorder %s2722_s25, %s3135_s26 }
 0x585   : > { %p2724_p5 = pnand %p2723_p2, %p2918_p12 }
 0x586   : > { %p2729_p4 = por %p2728_p1, %p2727_p11 }
 0x587   : > { %p2725_p0 = pneg %p2724_p5 }
 0x588   : > { %p2731_p8 = por %p2730_p6, %p2729_p4 }
 0x58a   : > { %p2732_p10 = pnand %p2731_p8, %p2725_p0 }
 0x58c   : > { %2735 = shalt.err (!%p2732_p10)
}
 0x58d   : > { %2540 = dma.vmem_to_hbm [thread:$0]  (%p2918_p12), %s3137_s6, 128, %s3135_s26, %s2146_s8  }
 0x58e PF: > { %s2178_s10 = sand.u32 1, %s2766_s15   ;;  %p3199_p13 = scmp.ne.s32.totalorder %s3189_s22, 0 }
 0x58f   : > { %p3200_p3 = scmp.ge.s32.totalorder %s2778_s18, 2  ;;  %s2179_s14 = scalar_lea.sflag [#allocation8], %s2178_s10 }
 0x591   : > { %p2551_p7 = pnand %p3200_p3, %p3199_p13 }
 0x593   : > { %2761 = dma.done.wait (!%p2551_p7), %s2179_s14, 128  }
 0x594   : > { %2763 = vsyncadd (!%p2551_p7), %s2179_s14, 4294967168  ;;  %p19_p9 = scmp.ge.s32.totalorder %s2883_s27, 4   ;;  %s3201_s15 = smov %s2770_s16 }
 0x595   : > { %s3202_s16 = smov %s2774_s17  ;;  %s3203_s17 = smov %s2914_s24 }
 0x596   : > { %s3204_s18 = smov %s2883_s27  ;;  %21 = sbr.rel (!%p19_p9) target bundleno = 6 (0x6), region = 96 }
 0x59d   :  { %2191 = vsyncpa [#allocation7], 1 }
 0x59e   :  { %2193 = vsyncpa [#allocation7 + $0x1], 1 }
 0x59f   :  { %2194 = vsyncpa [#allocation10], 1 }
 0x5a0   :  { %2195 = vsyncpa [#allocation8], 1 }
 0x5a1   :  { %2197 = vsyncpa [#allocation8 + $0x1], 1 }

</bundles_post_ra>
